<compile_context>
chip_gen: v7x
topology: tpu7x:2x2x1
jax: 0.10.0
libtpu: 0.0.40
codegen_flags: <defaults>
</compile_context>

<pallas_src>
import jax
import jax.numpy as jnp
import numpy as np
from jax import lax
from jax.experimental import pallas as pl
from jax.experimental.pallas import tpu as pltpu

_VMEM_LIMIT = 64 * 1024 * 1024  # generous headroom; tiles use < 6 MiB total


# ------------------------- Pallas kernel -------------------------

def _mlp_kernel(x_ref, w1_ref, b1_ref, w2_ref, b2_ref, o_ref, acc_ref):
    """Fused fc1(+ReLU)+fc2 with the fc1 K-reduction over grid axis 0.

    x:  (B, tk)  bf16      w1: (tk, H) bf16      b1: (1, H) f32
    w2: (H, N)   f32       b2: (1, N)  f32       o:  (B, N) f32
    acc (scratch): (B, H) f32 — hidden pre-activation accumulator (VMEM).
    """
    k = pl.program_id(0)

    @pl.when(k == 0)
    def _():
        acc_ref[...] = jnp.zeros_like(acc_ref)

    # fc1 partial product for this K tile (bf16 x bf16 -> f32 accumulate, MXU).
    acc_ref[...] += jnp.dot(x_ref[...], w1_ref[...],
                            preferred_element_type=jnp.float32)

    @pl.when(k == pl.num_programs(0) - 1)
    def _():
        h = jnp.maximum(acc_ref[...] + b1_ref[...], 0.0)          # bias + ReLU
        y = jnp.dot(h, w2_ref[...],
                    preferred_element_type=jnp.float32) + b2_ref[...]
        o_ref[...] = y.astype(o_ref.dtype)


# ------------------------- Wrapper -------------------------

def _pick_tk(K):
    # Largest "nice" K tile that divides K (K = 30720 -> 7680 -> 4 grid steps).
    for tk in (7680, 6144, 5120, 4096, 3840, 2048, 1024, 512, 256, 128):
        if K % tk == 0:
            return tk
    return K


def mlp_forward(x, p):
    """x: (B, 30720) f32 -> (B, 11) f32."""
    B, K = x.shape
    H = p["w1"].shape[1]           # 128
    N = p["w2"].shape[1]           # 11
    tk = _pick_tk(K)
    steps = K // tk

    xb = x.astype(p["w1"].dtype)   # bf16 activations into the MXU

    return pl.pallas_call(
        _mlp_kernel,
        out_shape=jax.ShapeDtypeStruct((B, N), jnp.float32),
        grid=(steps,),
        in_specs=[
            pl.BlockSpec((B, tk), lambda k: (0, k)),     # x K-tile
            pl.BlockSpec((tk, H), lambda k: (k, 0)),     # w1 K-tile (bf16 stream)
            pl.BlockSpec((1, H), lambda k: (0, 0)),      # b1 (VMEM-resident)
            pl.BlockSpec((H, N), lambda k: (0, 0)),      # w2 (tiny, resident)
            pl.BlockSpec((1, N), lambda k: (0, 0)),      # b2 (resident)
        ],
        out_specs=pl.BlockSpec((B, N), lambda k: (0, 0)),
        scratch_shapes=[pltpu.VMEM((B, H), jnp.float32)],
        compiler_params=pltpu.CompilerParams(
            dimension_semantics=("arbitrary",),          # K axis is a reduction
            vmem_limit_bytes=_VMEM_LIMIT),
    )(xb, p["w1"], p["b1"].reshape(1, H), p["w2"], p["b2"].reshape(1, N))


# ------------------------- Params / reference -------------------------

def init_params(key):
    """nn.Linear-style init; weights stored as (in, out) (transpose of torch)."""
    k1, k2, k3, k4 = jax.random.split(key, 4)
    bound1 = 1.0 / np.sqrt(30720.0)
    bound2 = 1.0 / np.sqrt(128.0)
    w1 = jax.random.uniform(k1, (30720, 128), jnp.float32, -bound1, bound1)
    b1 = jax.random.uniform(k2, (128,), jnp.float32, -bound1, bound1)
    w2 = jax.random.uniform(k3, (128, 11), jnp.float32, -bound2, bound2)
    b2 = jax.random.uniform(k4, (11,), jnp.float32, -bound2, bound2)
    # fc1 weight kept in bf16 (memory-bound stream); fc2 + biases stay f32.
    return {"w1": w1.astype(jnp.bfloat16), "b1": b1, "w2": w2, "b2": b2}


def reference_forward(x, p):
    """Pure-JAX reference using the same (bf16-stored) parameters."""
    hp = lax.Precision.HIGHEST
    xb = x.astype(p["w1"].dtype).astype(jnp.float32)
    w1 = p["w1"].astype(jnp.float32)
    h = jnp.maximum(jnp.dot(xb, w1, precision=hp) + p["b1"], 0.0)
    return jnp.dot(h, p["w2"], precision=hp) + p["b2"]


# ------------------------- Main -------------------------

if __name__ == "__main__":
    key = jax.random.PRNGKey(0)
    params = init_params(key)
    # forward implies x: (B, 30720); use a small batch of 2
    x = jax.random.normal(jax.random.fold_in(key, 123), (2, 30720), jnp.float32)

    fwd = jax.jit(mlp_forward)
    out = jax.block_until_ready(fwd(x, params))
    assert out.shape == (2, 11), out.shape
    assert bool(jnp.all(jnp.isfinite(out)))

    ref = jax.block_until_ready(reference_forward(x, params))
    np.testing.assert_allclose(np.asarray(out), np.asarray(ref),
                               rtol=2e-2, atol=2e-2)

    print("KERNEL_OK")
</pallas_src>

<mosaic_0001>
module attributes {stable_mosaic.version = 11 : i64} {
  func.func @_mlp_kernel(%arg0: i32, %arg1: memref<2x7680xbf16, #tpu.memory_space<vmem>>, %arg2: memref<7680x128xbf16, #tpu.memory_space<vmem>>, %arg3: memref<1x128xf32, #tpu.memory_space<vmem>>, %arg4: memref<128x11xf32, #tpu.memory_space<vmem>>, %arg5: memref<1x11xf32, #tpu.memory_space<vmem>>, %arg6: memref<2x11xf32, #tpu.memory_space<vmem>>, %arg7: memref<2x128xf32, #tpu.memory_space<vmem>>) attributes {dimension_semantics = [#tpu.dimension_semantics<arbitrary>], iteration_bounds = array<i64: 4>, scalar_prefetch = 0 : i64, scratch_operands = 1 : i64, tpu.core_type = #tpu.core_type<tc>, window_params = [{transform_indices = @transform_0, window_bounds = array<i64: 2, 7680>}, {transform_indices = @transform_1, window_bounds = array<i64: 7680, 128>}, {pipeline_mode = #tpu.pipeline_mode<synchronous>, transform_indices = @transform_2, window_bounds = array<i64: 1, 128>}, {pipeline_mode = #tpu.pipeline_mode<synchronous>, transform_indices = @transform_3, window_bounds = array<i64: 128, 11>}, {pipeline_mode = #tpu.pipeline_mode<synchronous>, transform_indices = @transform_4, window_bounds = array<i64: 1, 11>}, {pipeline_mode = #tpu.pipeline_mode<synchronous>, transform_indices = @transform_5, window_bounds = array<i64: 2, 11>}]} {
    %c0_i32 = arith.constant 0 : i32
    %0 = arith.cmpi eq, %arg0, %c0_i32 : i32
    %1 = arith.extui %0 : i1 to i32
    %c0_i32_0 = arith.constant 0 : i32
    %2 = arith.cmpi ne, %1, %c0_i32_0 : i32
    scf.if %2 {
      %cst_9 = arith.constant 0.000000e+00 : f32
      %12 = vector.broadcast %cst_9 : f32 to vector<2x128xf32>
      %c0_10 = arith.constant 0 : index
      %c0_11 = arith.constant 0 : index
      %13 = vector.load %arg7[%c0_10, %c0_11] : memref<2x128xf32, #tpu.memory_space<vmem>>, vector<2x128xf32>
      tpu.vector_store %arg7[%c0_10, %c0_11], %12 {strides = array<i32>} : memref<2x128xf32, #tpu.memory_space<vmem>>, vector<2x128xf32>,
    } else {
    }
    %c0 = arith.constant 0 : index
    %c0_1 = arith.constant 0 : index
    %3 = vector.load %arg7[%c0, %c0_1] : memref<2x128xf32, #tpu.memory_space<vmem>>, vector<2x128xf32>
    %c0_2 = arith.constant 0 : index
    %c0_3 = arith.constant 0 : index
    %4 = vector.load %arg1[%c0_2, %c0_3] : memref<2x7680xbf16, #tpu.memory_space<vmem>>, vector<2x7680xbf16>
    %c0_4 = arith.constant 0 : index
    %c0_5 = arith.constant 0 : index
    %5 = vector.load %arg2[%c0_4, %c0_5] : memref<7680x128xbf16, #tpu.memory_space<vmem>>, vector<7680x128xbf16>
    %cst = arith.constant dense<0.000000e+00> : vector<2x128xf32>
    %6 = tpu.matmul %4, %5, %cst {dimension_numbers = #tpu.dot_dimension_numbers<[1], [0], [0], [1], [0, 0, 1, 1], [], []>} : vector<2x7680xbf16>, vector<7680x128xbf16>, vector<2x128xf32> -> vector<2x128xf32>
    %7 = arith.addf %3, %6 : vector<2x128xf32>
    %c0_6 = arith.constant 0 : index
    %c0_7 = arith.constant 0 : index
    %8 = vector.load %arg7[%c0_6, %c0_7] : memref<2x128xf32, #tpu.memory_space<vmem>>, vector<2x128xf32>
    tpu.vector_store %arg7[%c0_6, %c0_7], %7 {strides = array<i32>} : memref<2x128xf32, #tpu.memory_space<vmem>>, vector<2x128xf32>,
    %c3_i32 = arith.constant 3 : i32
    %9 = arith.cmpi eq, %arg0, %c3_i32 : i32
    %10 = arith.extui %9 : i1 to i32
    %c0_i32_8 = arith.constant 0 : i32
    %11 = arith.cmpi ne, %10, %c0_i32_8 : i32
    scf.if %11 {
      %c0_9 = arith.constant 0 : index
      %c0_10 = arith.constant 0 : index
      %12 = vector.load %arg7[%c0_9, %c0_10] : memref<2x128xf32, #tpu.memory_space<vmem>>, vector<2x128xf32>
      %c0_11 = arith.constant 0 : index
      %c0_12 = arith.constant 0 : index
      %13 = vector.load %arg3[%c0_11, %c0_12] : memref<1x128xf32, #tpu.memory_space<vmem>>, vector<1x128xf32>
      %14 = vector.broadcast %13 : vector<1x128xf32> to vector<2x128xf32>
      %15 = arith.addf %12, %14 : vector<2x128xf32>
      %cst_13 = arith.constant 0.000000e+00 : f32
      %16 = vector.broadcast %cst_13 : f32 to vector<2x128xf32>
      %17 = arith.maximumf %15, %16 : vector<2x128xf32>
      %c0_14 = arith.constant 0 : index
      %c0_15 = arith.constant 0 : index
      %18 = vector.load %arg4[%c0_14, %c0_15] : memref<128x11xf32, #tpu.memory_space<vmem>>, vector<128x11xf32>
      %cst_16 = arith.constant dense<0.000000e+00> : vector<2x11xf32>
      %19 = tpu.matmul %17, %18, %cst_16 {dimension_numbers = #tpu.dot_dimension_numbers<[1], [0], [0], [1], [0, 0, 1, 1], [], []>} : vector<2x128xf32>, vector<128x11xf32>, vector<2x11xf32> -> vector<2x11xf32>
      %c0_17 = arith.constant 0 : index
      %c0_18 = arith.constant 0 : index
      %20 = vector.load %arg5[%c0_17, %c0_18] : memref<1x11xf32, #tpu.memory_space<vmem>>, vector<1x11xf32>
      %21 = vector.broadcast %20 : vector<1x11xf32> to vector<2x11xf32>
      %22 = arith.addf %19, %21 : vector<2x11xf32>
      %c0_19 = arith.constant 0 : index
      %c0_20 = arith.constant 0 : index
      %23 = vector.load %arg6[%c0_19, %c0_20] : memref<2x11xf32, #tpu.memory_space<vmem>>, vector<2x11xf32>
      tpu.vector_store %arg6[%c0_19, %c0_20], %22 {strides = array<i32>} : memref<2x11xf32, #tpu.memory_space<vmem>>, vector<2x11xf32>,
    } else {
    }
    return
  }
  func.func @transform_0(%arg0: i32) -> (i32, i32) {
    %c0_i32 = arith.constant 0 : i32
    %c0_i32_0 = arith.constant 0 : i32
    return %c0_i32, %arg0 : i32, i32
  }
  func.func @transform_1(%arg0: i32) -> (i32, i32) {
    %c0_i32 = arith.constant 0 : i32
    %c0_i32_0 = arith.constant 0 : i32
    return %arg0, %c0_i32 : i32, i32
  }
  func.func @transform_2(%arg0: i32) -> (i32, i32) {
    %c0_i32 = arith.constant 0 : i32
    %c0_i32_0 = arith.constant 0 : i32
    %c0_i32_1 = arith.constant 0 : i32
    return %c0_i32, %c0_i32_0 : i32, i32
  }
  func.func @transform_3(%arg0: i32) -> (i32, i32) {
    %c0_i32 = arith.constant 0 : i32
    %c0_i32_0 = arith.constant 0 : i32
    %c0_i32_1 = arith.constant 0 : i32
    return %c0_i32, %c0_i32_0 : i32, i32
  }
  func.func @transform_4(%arg0: i32) -> (i32, i32) {
    %c0_i32 = arith.constant 0 : i32
    %c0_i32_0 = arith.constant 0 : i32
    %c0_i32_1 = arith.constant 0 : i32
    return %c0_i32, %c0_i32_0 : i32, i32
  }
  func.func @transform_5(%arg0: i32) -> (i32, i32) {
    %c0_i32 = arith.constant 0 : i32
    %c0_i32_0 = arith.constant 0 : i32
    %c0_i32_1 = arith.constant 0 : i32
    return %c0_i32, %c0_i32_0 : i32, i32
  }
}

</mosaic_0001>

<bundles_post_ra>
// kernel: mlp_forward.1
= control target key start
LH: loop header
LB: loop body
LE: loop exit
PB: predicated region body
PF: predicated region fallthrough
CT: control target
= control target key end

     0   :  { %10 = vsyncpa [#allocation4], 0  ;;  %s8967_s0 = inlined_call_operand.hbm [shape: bf16[2,30720], index: 0, kind: input, shape index: {}]   ;;  %s8968_s1 = inlined_call_operand.hbm [shape: bf16[30720,128], index: 1, kind: input, shape index: {}]   ;;  %s8969_s2 = inlined_call_operand.hbm [shape: f32[1,128], index: 2, kind: input, shape index: {}]   ;;  %s8970_s3 = inlined_call_operand.hbm [shape: f32[128,11], index: 3, kind: input, shape index: {}]   ;;  %s8971_s4 = inlined_call_operand.hbm [shape: f32[1,11], index: 4, kind: input, shape index: {}]   ;;  %s8972_s5 = inlined_call_operand.hbm [shape: f32[2,11], index: 5, kind: output, shape index: {}]  }
   0x1   :  { %12 = vsyncpa [#allocation4 + $0x1], 0 }
   0x2   :  { %13 = vsyncpa [#allocation7], 0 }
   0x3   :  { %15 = vsyncpa [#allocation7 + $0x1], 0 }
   0x4   :  { %16 = vsyncpa [#allocation10], 0 }
   0x5   :  { %17 = vsyncpa [#allocation5], 0  ;;  %s8107_s18 = smov 0   ;;  %s8109_s19 = smov 0  }
   0x6   :  { %s8111_s20 = smov 0   ;;  %s8113_s21 = smov 0  }
   0x7 LB: > { %s8126_s22 = sadd.s32 4294967295, %s8060_s21   ;;  %p43_p0 = scmp.ne.s32.totalorder %s8052_s19, %s8048_s18  ;;  %s8060_s21 = sphi %s8113_s21, %s8991_s21   ;;  %s8056_s20 = sphi %s8111_s20, %s8990_s20   ;;  %s8052_s19 = sphi %s8109_s19, %s8989_s19   ;;  %s8048_s18 = sphi %s8107_s18, %s8988_s18  }
   0x8   : > { %p8973_p1 = scmp.eq.s32.totalorder %s8126_s22, 0  ;;  %p6020_p2 = scmp.ge.s32.totalorder %s8060_s21, 1 }
   0x9   : > { %p164_p3 = scmp.lt.s32.totalorder %s8060_s21, 5  ;;  %s8062_s25 = smov [#allocation8]  }
   0xa   : > { %p8135_p5 = por %p8973_p1, %p43_p0  ;;  %s177_s26 = sshll.u32 %s8062_s25, 4  ;;  %s178_s26 = int_to_ptr.vmem [resolvable:$true] %s177_s26 }
   0xb   : > { %p8139_p6 = pnand %p6020_p2, %p164_p3  ;;  %s8063_s27 = smov [#allocation9]  }
   0xc   : > { %s8976_s23 = scalar_select %p8135_p5, 1, 0 }
   0xd   : > { %s8977_s24 = scalar_select %p8139_p6, 1, 0 }
   0xe   : > { %p7282_p7 = pneg %p8139_p6  ;;  %s187_s28 = sshll.u32 %s8063_s27, 4  ;;  %s8151_s28 = int_to_ptr.vmem [resolvable:$true] %s187_s28 }
   0xf   : > { %s8064_s30 = smov [#allocation11]   ;;  %s7840_s9 = scalar_lea.hbm %s8969_s2, 16 }
  0x10   : > { %p8147_p8 = pnand %p7282_p7, %p8973_p1  ;;  %s8153_s6 = sshll.u32 %s8064_s30, 4  ;;  %s202_s6 = int_to_ptr.vmem [resolvable:$true] %s8153_s6 }
  0x11   : > { %p7841_p9 = scmp.ne.s32.totalorder %s8969_s2, %s7840_s9  ;;  %p7847_p13 = scmp.lt.u32.totalorder %s7840_s9, %s8969_s2 }
  0x12   : > { %p8163_p10 = pneg %p8147_p8 }
  0x14   : > { %p7843_p11 = pnand %p8163_p10, %p7841_p9 }
  0x16   : > { %p7844_p12 = pneg %p7843_p11 }
  0x18   : > { %p7849_p0 = pnand %p7847_p13, %p7844_p12 }
  0x1a   : > { %7852 = shalt.err (!%p7849_p0)
}
  0x1b   : > { %s7853_s15 = scalar_lea.vmem %s178_s26, 16  ;;  %s7860_s16 = scalar_lea.vmem %s178_s26, 32 }
  0x1c   : > { %p7854_p2 = scmp.ne.s32.totalorder %s178_s26, %s7853_s15  ;;  %p7861_p4 = scmp.lt.s32.totalorder %s178_s26, %s178_s26 }
  0x1d   : > { %p7862_p1 = scmp.lt.s32.totalorder %s7860_s16, %s7853_s15 }
  0x1e   : > { %p7856_p3 = pnand %p7854_p2, %p8163_p10 }
  0x1f   : > { %p7863_p5 = por %p7862_p1, %p7861_p4 }
  0x20   : > { %p7857_p7 = pneg %p7856_p3 }
  0x22   : > { %p7864_p6 = pnand %p7863_p5, %p7857_p7 }
  0x24   : > { %7867 = shalt.err (!%p7864_p6)
}
  0x25   : > { %7285 = dma.hbm_to_vmem [thread:$0]  (!%p8147_p8), %s8969_s2, 16, %s178_s26, [#allocation7]  }
  0x26   : > { %s7868_s30 = scalar_lea.hbm %s8970_s3, 2048 }
  0x27   : > { %p7869_p9 = scmp.ne.s32.totalorder %s8970_s3, %s7868_s30  ;;  %p7875_p4 = scmp.lt.u32.totalorder %s7868_s30, %s8970_s3 }
  0x29   : > { %p7871_p11 = pnand %p7869_p9, %p8163_p10 }
  0x2b   : > { %p7872_p1 = pneg %p7871_p11 }
  0x2d   : > { %p7877_p5 = pnand %p7875_p4, %p7872_p1 }
  0x2f   : > { %7880 = shalt.err (!%p7877_p5)
}
  0x30   : > { %s7881_s26 = scalar_lea.vmem %s8151_s28, 2048  ;;  %p7889_p0 = scmp.lt.s32.totalorder %s8151_s28, %s8151_s28 }
  0x31   : > { %p7882_p6 = scmp.ne.s32.totalorder %s8151_s28, %s7881_s26  ;;  %p7890_p2 = scmp.lt.s32.totalorder %s7881_s26, %s7881_s26 }
  0x33   : > { %p7884_p12 = pnand %p7882_p6, %p8163_p10  ;;  %p7891_p3 = por %p7890_p2, %p7889_p0 }
  0x35   : > { %p7885_p13 = pneg %p7884_p12 }
  0x37   : > { %p7892_p7 = pnand %p7891_p3, %p7885_p13 }
  0x39   : > { %7895 = shalt.err (!%p7892_p7)
}
  0x3a   : > { %s8065_s11 = smov 128   ;;  %s8066_s13 = smov 8  }
  0x3b   : > { %7288 = dma.hbm_to_vmem [thread:$0]  (!%p8147_p8), %s8970_s3, 2048, %s8151_s28, [#allocation10], %s8065_s11, %s8065_s11, %s8066_s13  }
  0x3c   : > { %s7896_s18 = scalar_lea.hbm %s8971_s4, 16 }
  0x3d   : > { %p7897_p9 = scmp.ne.s32.totalorder %s8971_s4, %s7896_s18  ;;  %p7903_p4 = scmp.lt.u32.totalorder %s7896_s18, %s8971_s4 }
  0x3f   : > { %p7899_p11 = pnand %p7897_p9, %p8163_p10 }
  0x41   : > { %p7900_p1 = pneg %p7899_p11 }
  0x43   : > { %p7905_p5 = pnand %p7903_p4, %p7900_p1 }
  0x45   : > { %7908 = shalt.err (!%p7905_p5)
}
  0x46   : > { %s7909_s8 = scalar_lea.vmem %s202_s6, 16  ;;  %s7916_s28 = scalar_lea.vmem %s202_s6, 32 }
  0x47   : > { %p7910_p6 = scmp.ne.s32.totalorder %s202_s6, %s7909_s8  ;;  %p7917_p0 = scmp.lt.s32.totalorder %s202_s6, %s202_s6 }
  0x48   : > { %p7918_p2 = scmp.lt.s32.totalorder %s7916_s28, %s7909_s8 }
  0x49   : > { %p7912_p12 = pnand %p7910_p6, %p8163_p10 }
  0x4a   : > { %p7919_p3 = por %p7918_p2, %p7917_p0 }
  0x4b   : > { %p7913_p13 = pneg %p7912_p12 }
  0x4d   : > { %p7920_p7 = pnand %p7919_p3, %p7913_p13 }
  0x4f   : > { %7923 = shalt.err (!%p7920_p7)
}
  0x50   : > { %7291 = dma.hbm_to_vmem [thread:$0]  (!%p8147_p8), %s8971_s4, 16, %s202_s6, [#allocation10]  }
  0x51   : > { %s8222_s12 = sadd.s32 1, %s8060_s21   ;;  %s30_s11 = sadd.s32 1, %s8056_s20 }
  0x52   : > { %s27_s26 = ssub.s32 %s8060_s21, %s8222_s12  ;;  %p37_p9 = scmp.ne.s32.totalorder %s8056_s20, %s8052_s19 }
  0x53   : > { %p28_p10 = scmp.eq.s32.totalorder %s27_s26, 0  ;;  %p38_p11 = scmp.eq.s32.totalorder %s8060_s21, 0 }
  0x54   : > { %p7302_p1 = scmp.lt.s32.totalorder %s8060_s21, 4  ;;  %s8235_s13 = sand.u32 1, %s8056_s20  }
  0x55   : > { %s8232_s29 = scalar_select %p28_p10, %s8056_s20, %s30_s11  }
  0x56   : > { %p39_p4 = por %p38_p11, %p37_p9  ;;  %s7258_s14 = smul.u32 60, %s8235_s13 }
  0x57   : > { %s6520_s15 = smul.u32 960, %s8060_s21  ;;  %s213_s7 = scalar_lea.sflag [#allocation4], %s8235_s13 }
  0x58   : > { %p8239_p8 = pnand %p7302_p1, %p39_p4  ;;  %s7259_s16 = smul.u32 3840, %s8235_s13 }
  0x59   : > { %s8247_s25 = scalar_lea.hbm %s8967_s0, %s6520_s15  ;;  %s216_s27 = scalar_lea.vmem [#allocation3], %s7258_s14 }
  0x5a   : > { %s224_s30 = sshll.u32 %s216_s27, 4  ;;  %s7924_s8 = scalar_lea.hbm %s8247_s25, 960  ;;  %s8249_s30 = int_to_ptr.vmem [resolvable:$true] %s224_s30 }
  0x5b   : > { %p7925_p5 = scmp.ne.s32.totalorder %s8247_s25, %s7924_s8  ;;  %p7926_p6 = pneg %p8239_p8 }
  0x5c   : > { %s7929_s10 = scalar_lea.hbm %s8967_s0, 3840  ;;  %p7930_p0 = scmp.lt.u32.totalorder %s8247_s25, %s8967_s0 }
  0x5d   : > { %p7927_p12 = pnand %p7926_p6, %p7925_p5  ;;  %p7931_p2 = scmp.lt.u32.totalorder %s7929_s10, %s7924_s8 }
  0x5e   : > { %p7933_p7 = scmp.lt.u32.totalorder %s7924_s8, %s8247_s25 }
  0x5f   : > { %p7928_p13 = pneg %p7927_p12  ;;  %p7932_p3 = por %p7931_p2, %p7930_p0 }
  0x61   : > { %p7934_p10 = por %p7933_p7, %p7932_p3 }
  0x63   : > { %p7935_p9 = pnand %p7934_p10, %p7928_p13 }
  0x65   : > { %7938 = shalt.err (!%p7935_p9)
}
  0x66   : > { %s7939_s14 = scalar_lea.vmem %s8249_s30, 960  ;;  %s8067_s15 = smov [#allocation3]  }
  0x67   : > { %p7940_p11 = scmp.ne.s32.totalorder %s8249_s30, %s7939_s14  ;;  %s7944_s17 = sshll.u32 %s8067_s15, 4  ;;  %s7945_s17 = int_to_ptr.vmem [resolvable:$false] %s7944_s17 }
  0x68   : > { %s7946_s18 = scalar_lea.vmem %s7945_s17, 1920  ;;  %p7947_p5 = scmp.lt.s32.totalorder %s8249_s30, %s7945_s17 }
  0x69   : > { %p7942_p1 = pnand %p7940_p11, %p7926_p6  ;;  %p7948_p12 = scmp.lt.s32.totalorder %s7946_s18, %s7939_s14 }
  0x6b   : > { %p7943_p4 = pneg %p7942_p1  ;;  %p7949_p0 = por %p7948_p12, %p7947_p5 }
  0x6d   : > { %p7950_p2 = pnand %p7949_p0, %p7943_p4 }
  0x6f   : > { %7953 = shalt.err (!%p7950_p2)
}
  0x70   : > { %7295 = dma.hbm_to_vmem [thread:$0]  (!%p8239_p8), %s8247_s25, 960, %s8249_s30, %s213_s7  }
  0x71   : > { %s231_s27 = sand.u32 1, %s8060_s21   ;;  %s235_s8 = scalar_lea.vmem [#allocation6], %s7259_s16 }
  0x72   : > { %s242_s28 = sshll.u32 %s235_s8, 4  ;;  %s6521_s9 = smul.u32 61440, %s8060_s21  ;;  %s8280_s28 = int_to_ptr.vmem [resolvable:$true] %s242_s28 }
  0x73   : > { %s8288_s14 = scalar_lea.sflag [#allocation7], %s231_s27  ;;  %s7959_s21 = scalar_lea.hbm %s8968_s1, 245760 }
  0x74   : > { %s8286_s11 = scalar_lea.hbm %s8968_s1, %s6521_s9 }
  0x75   : > { %s7954_s15 = scalar_lea.hbm %s8286_s11, 61440  ;;  %p7960_p10 = scmp.lt.u32.totalorder %s8286_s11, %s8968_s1 }
  0x76   : > { %p7955_p13 = scmp.ne.s32.totalorder %s8286_s11, %s7954_s15  ;;  %p7961_p9 = scmp.lt.u32.totalorder %s7959_s21, %s7954_s15 }
  0x77   : > { %p7963_p1 = scmp.lt.u32.totalorder %s7954_s15, %s8286_s11 }
  0x78   : > { %p7957_p3 = pnand %p7955_p13, %p7926_p6  ;;  %p7962_p11 = por %p7961_p9, %p7960_p10 }
  0x7a   : > { %p7958_p7 = pneg %p7957_p3  ;;  %p7964_p4 = por %p7963_p1, %p7962_p11 }
  0x7c   : > { %p7965_p5 = pnand %p7964_p4, %p7958_p7 }
  0x7e   : > { %7968 = shalt.err (!%p7965_p5)
}
  0x7f   : > { %s7969_s7 = scalar_lea.vmem %s8280_s28, 61440  ;;  %s8068_s17 = smov [#allocation6]  }
  0x80   : > { %p7970_p12 = scmp.ne.s32.totalorder %s8280_s28, %s7969_s7  ;;  %s7974_s18 = sshll.u32 %s8068_s17, 4  ;;  %s7975_s18 = int_to_ptr.vmem [resolvable:$false] %s7974_s18 }
  0x81   : > { %s7976_s27 = scalar_lea.vmem %s7975_s18, 122880  ;;  %p7977_p13 = scmp.lt.s32.totalorder %s8280_s28, %s7975_s18 }
  0x82   : > { %p7972_p0 = pnand %p7970_p12, %p7926_p6  ;;  %p7978_p3 = scmp.lt.s32.totalorder %s7976_s27, %s7969_s7 }
  0x84   : > { %p7973_p2 = pneg %p7972_p0  ;;  %p7979_p10 = por %p7978_p3, %p7977_p13 }
  0x86   : > { %p7980_p9 = pnand %p7979_p10, %p7973_p2 }
  0x88   : > { %7983 = shalt.err (!%p7980_p9)
}
  0x89   : > { %s8069_s8 = smov 64   ;;  %s8070_s9 = smov 4  }
  0x8a   : > { %7298 = dma.hbm_to_vmem [thread:$0]  (!%p8239_p8), %s8286_s11, 61440, %s8280_s28, %s8288_s14, %s8069_s8, %s8069_s8, %s8070_s9  }
  0x8b   : > { %p8981_p6 = scmp.ne.s32.totalorder %s8977_s24, 0 }
  0x8c   : > { %s256_s10 = sand.u32 (!%p8981_p6), 1, %s8052_s19   ;;  %p8982_p7 = scmp.ne.s32.totalorder (!%p8981_p6), %s8976_s23, 0 }
  0x8d   : > { %254 = sbr.rel (%p8981_p6) target bundleno = 1123 (0x463), region = 40  ;;  %s257_s15 = scalar_lea.sflag (!%p8981_p6), [#allocation4], %s256_s10 }
  0x8e   : > { %s7260_s26 = smul.u32 (!%p8981_p6), 60, %s256_s10 }
  0x90   : > { %s8317_s13 = scalar_lea.vmem (!%p8981_p6), [#allocation3], %s7260_s26 }
  0x94   : > { %8027 = dma.done.wait (%p8982_p7), %s257_s15, 960  }
  0x95   : > { %8029 = vsyncadd (%p8982_p7), %s257_s15, 4294966336  ;;  %s265_s16 = sand.u32 1, %s8126_s22   ;;  %s7261_s6 = smul.u32 3840, %s256_s10 }
  0x96   : > { %s266_s28 = scalar_lea.sflag [#allocation7], %s265_s16 }
  0x97   : > { %s8324_s11 = scalar_lea.vmem [#allocation6], %s7261_s6 }
  0x98   : > { %8031 = dma.done.wait (%p8982_p7), %s266_s28, 61440  }
  0x99   : > { %8033 = vsyncadd (%p8982_p7), %s266_s28, 4294905856  ;;  %p8983_p8 = scmp.eq.s32.totalorder %s8126_s22, 0 }
  0x9b   : > { %8035 = dma.done.wait (%p8983_p8), [#allocation7], 16   ;;  %p8984_p11 = pmov %p8983_p8 }
  0x9c   : > { %p8985_p1 = pmov %p8983_p8 }
  0x9d   : > { %8037 = vsyncadd (%p8984_p11), [#allocation7], 4294967280 }
  0x9e   : > { %8039 = dma.done.wait (%p8985_p1), [#allocation10], 2064   ;;  %p8986_p4 = pmov %p8985_p1 }
  0x9f   : > { %p8987_p5 = scmp.ne.s32.totalorder %s8126_s22, 0 }
  0xa0   : > { %8041 = vsyncadd (%p8986_p4), [#allocation10], 4294965232  ;;  %v8071_v0 = vmov (!%p8987_p5), 0.0  }
  0xa1   : > { %314 = sbr.rel (%p8987_p5) target bundleno = 168 (0xa8), region = 64  ;;  %315 = vst [vmem:[#allocation2] sm:$0x3] (!%p8987_p5), %v8071_v0 }
  0xa8 PF: > { %v7353_v1 = vld [vmem:[%s8324_s11 + $0x40] sm:$0xff]   ;;  %v7357_v5 = vld [vmem:[%s8324_s11 + $0x48] sm:$0xff]   ;;  %v7361_v9 = vld [vmem:[%s8324_s11 + $0x50] sm:$0xff]   ;;  %v1297_v29 = vlaneseq  ;;  %v8072_v37 = vmov 1966171168   ;;  %p6513_p12 = scmp.ne.s32.totalorder %s8126_s22, 3 }
  0xa9   : > { %v7354_v2 = vld [vmem:[%s8324_s11 + $0xc0] sm:$0xff]   ;;  %6522 = vmatprep.subr.bf16.mxu0 %v7353_v1  ;;  %v7358_v6 = vld [vmem:[%s8324_s11 + $0xc8] sm:$0xff]   ;;  %v7362_v10 = vld [vmem:[%s8324_s11 + $0xd0] sm:$0xff]   ;;  %v1295_v38 = vunpack.c.l.s4 %v8072_v37  ;;  %vm8074_vm0 = vmmov (!%p6513_p12), 0   ;;  %vm5909_vm1 = vcmask (!%p6513_p12), 82944  }
  0xaa   : > { %v7355_v3 = vld [vmem:[%s8324_s11] sm:$0xff]   ;;  %6544 = vmatprep.subr.bf16.mxu1 %v7354_v2  ;;  %v7359_v7 = vld [vmem:[%s8324_s11 + $0x8] sm:$0xff]   ;;  %v7363_v11 = vld [vmem:[%s8324_s11 + $0x10] sm:$0xff]   ;;  %v1298_v34 = vshrl.u32 %v1297_v29, 7 }
  0xab   : > { %v7356_v4 = vld [vmem:[%s8324_s11 + $0x80] sm:$0xff]   ;;  %6523 = vmatpush3.bf16.msra.mxu0 %v7355_v3  ;;  %v7360_v8 = vld [vmem:[%s8324_s11 + $0x88] sm:$0xff]   ;;  %v7364_v12 = vld [vmem:[%s8324_s11 + $0x90] sm:$0xff]   ;;  %v1296_v41 = vunpack.c.0.s8 %v1295_v38 }
  0xac   : > { %6545 = vmatpush3.bf16.msra.mxu1 %v7356_v4  ;;  %6524 = vmatprep.subr.bf16.mxu0 %v7357_v5  ;;  %v7365_v13 = vld [vmem:[%s8324_s11 + $0x58] sm:$0xff]   ;;  %v7369_v17 = vld [vmem:[%s8324_s11 + $0x60] sm:$0xff]   ;;  %v7373_v21 = vld [vmem:[%s8324_s11 + $0x68] sm:$0xff]  }
  0xad   : > { %6546 = vmatprep.subr.bf16.mxu1 %v7358_v6  ;;  %v7366_v14 = vld [vmem:[%s8324_s11 + $0xd8] sm:$0xff]   ;;  %v7370_v18 = vld [vmem:[%s8324_s11 + $0xe0] sm:$0xff]   ;;  %v7374_v22 = vld [vmem:[%s8324_s11 + $0xe8] sm:$0xff]   ;;  %v8375_v42 = vsub.s32 %v1296_v41, %v1298_v34 }
  0xae   : > { %v7367_v15 = vld [vmem:[%s8324_s11 + $0x18] sm:$0xff]   ;;  %v7371_v19 = vld [vmem:[%s8324_s11 + $0x20] sm:$0xff]   ;;  %v7375_v23 = vld [vmem:[%s8324_s11 + $0x28] sm:$0xff]  }
  0xaf   : > { %6525 = vmatpush3.bf16.msra.mxu0 %v7359_v7  ;;  %v7368_v16 = vld [vmem:[%s8324_s11 + $0x98] sm:$0xff]   ;;  %v7372_v20 = vld [vmem:[%s8324_s11 + $0xa0] sm:$0xff]   ;;  %v7376_v24 = vld [vmem:[%s8324_s11 + $0xa8] sm:$0xff]  }
  0xb0   : > { %6547 = vmatpush3.bf16.msra.mxu1 %v7360_v8  ;;  %6526 = vmatprep.subr.bf16.mxu0 %v7361_v9  ;;  %v7377_v25 = vld [vmem:[%s8324_s11 + $0x70] sm:$0xff]   ;;  %v7381_v30 = vld [vmem:[%s8324_s11 + $0x78] sm:$0xff]   ;;  %v317_v35 = vld [vmem:[%s8317_s13] sm:$0xff] }
  0xb1   : > { %6548 = vmatprep.subr.bf16.mxu1 %v7362_v10  ;;  %v7378_v26 = vld [vmem:[%s8324_s11 + $0xf0] sm:$0xff]   ;;  %v7382_v31 = vld [vmem:[%s8324_s11 + $0xf8] sm:$0xff]   ;;  %v7386_v36 = vld [vmem:[%s8324_s11 + $0x140] sm:$0xff]   ;;  %v1293_v40 = vcombine.high %v317_v35, %v317_v35  ;;  %v1300_v43 = vrot.slane %v317_v35, %v8375_v42 }
  0xb2   : > { %v7379_v27 = vld [vmem:[%s8324_s11 + $0x30] sm:$0xff]   ;;  %v7383_v32 = vld [vmem:[%s8324_s11 + $0x38] sm:$0xff]   ;;  %v7387_v39 = vld [vmem:[%s8324_s11 + $0x1c0] sm:$0xff]  }
  0xb3   : > { %6527 = vmatpush3.bf16.msra.mxu0 %v7363_v11  ;;  %v7380_v28 = vld [vmem:[%s8324_s11 + $0xb0] sm:$0xff]   ;;  %v7384_v33 = vld [vmem:[%s8324_s11 + $0xb8] sm:$0xff]   ;;  %v8379_v44 = vrot.slane %v1293_v40, %v8375_v42  ;;  %v1308_v45 = vcombine.high %v1300_v43, %v1300_v43  ;;  %v1316_v46 = vrot.slane %v1300_v43, %v8375_v42  ;;  %v7388_v48 = vld [vmem:[%s8324_s11 + $0x100] sm:$0xff]  }
  0xb4   : > { %6549 = vmatpush3.bf16.msra.mxu1 %v7364_v12  ;;  %6528 = vmatprep.subr.bf16.mxu0 %v7365_v13  ;;  %v7389_v50 = vld [vmem:[%s8324_s11 + $0x180] sm:$0xff]   ;;  %v7390_v53 = vld [vmem:[%s8324_s11 + $0x148] sm:$0xff]   ;;  %v7394_v59 = vld [vmem:[%s8324_s11 + $0x150] sm:$0xff]  }
  0xb5   : > { %6550 = vmatprep.subr.bf16.mxu1 %v7366_v14  ;;  %v1309_v47 = vcombine.high %v8379_v44, %v8379_v44  ;;  %v1330_v49 = vrot.slane %v1308_v45, %v8375_v42  ;;  %v1338_v52 = vcombine.high %v1316_v46, %v1316_v46  ;;  %v7391_v55 = vld [vmem:[%s8324_s11 + $0x1c8] sm:$0xff]   ;;  %v7395_v60 = vld [vmem:[%s8324_s11 + $0x1d0] sm:$0xff]   ;;  %v7398_v63 = vld [vmem:[%s8324_s11 + $0x158] sm:$0xff]  }
  0xb6   : > { %v7392_v56 = vld [vmem:[%s8324_s11 + $0x108] sm:$0xff]   ;;  %v7396_v61 = vld [vmem:[%s8324_s11 + $0x110] sm:$0xff]   ;;  %v7399_v0 = vld [vmem:[%s8324_s11 + $0x1d8] sm:$0xff]  }
  0xb7   : > { %6529 = vmatpush3.bf16.msra.mxu0 %v7367_v15  ;;  %v1337_v51 = vrot.slane %v1309_v47, %v8375_v42  ;;  %4632 = vmatprep.mubr.bf16.mxu0 %v1330_v49  ;;  %v1340_v54 = vcombine.high %v1330_v49, %v1330_v49  ;;  %v7393_v58 = vld [vmem:[%s8324_s11 + $0x188] sm:$0xff]   ;;  %v7397_v62 = vld [vmem:[%s8324_s11 + $0x190] sm:$0xff]   ;;  %v7400_v1 = vld [vmem:[%s8324_s11 + $0x118] sm:$0xff]  }
  0xb8   : > { %6551 = vmatpush3.bf16.msra.mxu1 %v7368_v16  ;;  %6530 = vmatprep.subr.bf16.mxu0 %v7369_v17  ;;  %v7401_v2 = vld [vmem:[%s8324_s11 + $0x198] sm:$0xff]   ;;  %v7402_v3 = vld [vmem:[%s8324_s11 + $0x160] sm:$0xff]   ;;  %v7406_v7 = vld [vmem:[%s8324_s11 + $0x168] sm:$0xff]  }
  0xb9   : > { %6552 = vmatprep.subr.bf16.mxu1 %v7370_v18  ;;  %v1341_v57 = vcombine.high %v1337_v51, %v1337_v51  ;;  %4672 = vmatprep.mubr.bf16.mxu1 %v1340_v54  ;;  %v7403_v4 = vld [vmem:[%s8324_s11 + $0x1e0] sm:$0xff]   ;;  %v7407_v8 = vld [vmem:[%s8324_s11 + $0x1e8] sm:$0xff]   ;;  %v7410_v11 = vld [vmem:[%s8324_s11 + $0x170] sm:$0xff]  }
  0xba   : > { %v7404_v5 = vld [vmem:[%s8324_s11 + $0x120] sm:$0xff]   ;;  %v7408_v9 = vld [vmem:[%s8324_s11 + $0x128] sm:$0xff]   ;;  %v7411_v12 = vld [vmem:[%s8324_s11 + $0x1f0] sm:$0xff]  }
  0xbb   : > { %6531 = vmatpush3.bf16.msra.mxu0 %v7371_v19  ;;  %v7405_v6 = vld [vmem:[%s8324_s11 + $0x1a0] sm:$0xff]   ;;  %v7409_v10 = vld [vmem:[%s8324_s11 + $0x1a8] sm:$0xff]   ;;  %v7412_v13 = vld [vmem:[%s8324_s11 + $0x130] sm:$0xff]   ;;  %v1323_v19 = vrot.slane %v8379_v44, %v8375_v42 }
  0xbc   : > { %6553 = vmatpush3.bf16.msra.mxu1 %v7372_v20  ;;  %6532 = vmatprep.subr.bf16.mxu0 %v7373_v21  ;;  %v7413_v14 = vld [vmem:[%s8324_s11 + $0x1b0] sm:$0xff]   ;;  %v7414_v15 = vld [vmem:[%s8324_s11 + $0x178] sm:$0xff]   ;;  %v7418_v20 = vld [vmem:[%s8324_s11 + $0x240] sm:$0xff]  }
  0xbd   : > { %6554 = vmatprep.subr.bf16.mxu1 %v7374_v22  ;;  %v7415_v16 = vld [vmem:[%s8324_s11 + $0x1f8] sm:$0xff]   ;;  %v7419_v21 = vld [vmem:[%s8324_s11 + $0x2c0] sm:$0xff]   ;;  %v7426_v29 = vld [vmem:[%s8324_s11 + $0x250] sm:$0xff]  }
  0xbe   : > { %v7416_v17 = vld [vmem:[%s8324_s11 + $0x138] sm:$0xff]   ;;  %v7420_v22 = vld [vmem:[%s8324_s11 + $0x200] sm:$0xff]   ;;  %v7438_v41 = vld [vmem:[%s8324_s11 + $0x268] sm:$0xff]  }
  0xbf   : > { %6533 = vmatpush3.bf16.msra.mxu0 %v7375_v23  ;;  %v7417_v18 = vld [vmem:[%s8324_s11 + $0x1b8] sm:$0xff]   ;;  %v7421_v23 = vld [vmem:[%s8324_s11 + $0x280] sm:$0xff]   ;;  %v7439_v43 = vld [vmem:[%s8324_s11 + $0x2e8] sm:$0xff]  }
  0xc0   : > { %6555 = vmatpush3.bf16.msra.mxu1 %v7376_v24  ;;  %6534 = vmatprep.subr.bf16.mxu0 %v7377_v25  ;;  %v1339_v24 = vcombine.high %v1323_v19, %v1323_v19  ;;  %v7422_v25 = vld [vmem:[%s8324_s11 + $0x248] sm:$0xff]   ;;  %v7431_v34 = vld [vmem:[%s8324_s11 + $0x2d8] sm:$0xff]   ;;  %v7434_v37 = vld [vmem:[%s8324_s11 + $0x260] sm:$0xff]  }
  0xc1   : > { %6556 = vmatprep.subr.bf16.mxu1 %v7378_v26  ;;  %v7423_v26 = vld [vmem:[%s8324_s11 + $0x2c8] sm:$0xff]   ;;  %v7432_v35 = vld [vmem:[%s8324_s11 + $0x218] sm:$0xff]   ;;  %v7435_v38 = vld [vmem:[%s8324_s11 + $0x2e0] sm:$0xff]  }
  0xc2   : > { %v7437_v40 = vld [vmem:[%s8324_s11 + $0x2a0] sm:$0xff]   ;;  %v7440_v44 = vld [vmem:[%s8324_s11 + $0x228] sm:$0xff]  }
  0xc3   : > { %6535 = vmatpush3.bf16.msra.mxu0 %v7379_v27  ;;  %v7424_v27 = vld [vmem:[%s8324_s11 + $0x208] sm:$0xff]  }
  0xc4   : > { %6557 = vmatpush3.bf16.msra.mxu1 %v7380_v28  ;;  %6536 = vmatprep.subr.bf16.mxu0 %v7381_v30  ;;  %v7425_v28 = vld [vmem:[%s8324_s11 + $0x288] sm:$0xff]   ;;  %v7427_v30 = vld [vmem:[%s8324_s11 + $0x2d0] sm:$0xff]  }
  0xc5   : > { %6558 = vmatprep.subr.bf16.mxu1 %v7382_v31  ;;  %v7428_v31 = vld [vmem:[%s8324_s11 + $0x210] sm:$0xff]   ;;  %v7441_v45 = vld [vmem:[%s8324_s11 + $0x2a8] sm:$0xff]  }
  0xc6   : > { %v318_v47 = vld [vmem:[%s8317_s13 + $0x8] sm:$0xff] }
  0xc7   : > { %6537 = vmatpush3.bf16.msra.mxu0 %v7383_v32  ;;  %v7429_v32 = vld [vmem:[%s8324_s11 + $0x290] sm:$0xff]   ;;  %v1349_v49 = vrot.slane %v318_v47, %v8375_v42 }
  0xc8   : > { %6559 = vmatpush3.bf16.msra.mxu1 %v7384_v33  ;;  %6566 = vmatprep.subr.bf16.mxu0 %v7386_v36  ;;  %v7430_v33 = vld [vmem:[%s8324_s11 + $0x258] sm:$0xff]  }
  0xc9   : > { %6588 = vmatprep.subr.bf16.mxu1 %v7387_v39  ;;  %v7433_v36 = vld [vmem:[%s8324_s11 + $0x298] sm:$0xff]   ;;  %v7436_v39 = vld [vmem:[%s8324_s11 + $0x220] sm:$0xff]  }
  0xca   : > { %4633 = vmatmul.mubr.bf16.vlgmr.msra.gmra.mrb[0].mxu0 %v1316_v46  ;;  %v7442_v46 = vld [vmem:[%s8324_s11 + $0x270] sm:$0xff]  }
  0xcb   : > { %6567 = vmatpush3.bf16.msra.mxu0 %v7388_v48  ;;  %4673 = vmatmul.mubr.bf16.vlgmr.msra.gmra.mrb[0].mxu1 %v1338_v52  ;;  %v7443_v48 = vld [vmem:[%s8324_s11 + $0x2f0] sm:$0xff]  }
  0xcc   : > { %6568 = vmatprep.subr.bf16.mxu0 %v7390_v53  ;;  %6589 = vmatpush3.bf16.msra.mxu1 %v7389_v50  ;;  %v1342_v50 = vcombine.high %v318_v47, %v318_v47  ;;  %v7445_v52 = vld [vmem:[%s8324_s11 + $0x2b0] sm:$0xff]   ;;  %v1357_v53 = vcombine.high %v1349_v49, %v1349_v49 }
  0xcd   : > { %4712 = vmatprep.mubr.bf16.mxu0 %v1337_v51  ;;  %6590 = vmatprep.subr.bf16.mxu1 %v7391_v55  ;;  %v7444_v51 = vld [vmem:[%s8324_s11 + $0x230] sm:$0xff]   ;;  %v7446_v55 = vld [vmem:[%s8324_s11 + $0x278] sm:$0xff]  }
  0xce   : > { %4752 = vmatprep.mubr.bf16.mxu1 %v1341_v57  ;;  %v8449_v54 = vrot.slane %v1342_v50, %v8375_v42  ;;  %v1379_v57 = vrot.slane %v1357_v53, %v8375_v42  ;;  %v7493_v47 = vld [vmem:[%s8324_s11 + $0x410] sm:$0xff]   ;;  %v7496_v50 = vld [vmem:[%s8324_s11 + $0x4d8] sm:$0xff]   ;;  %v7499_v53 = vld [vmem:[%s8324_s11 + $0x460] sm:$0xff]  }
  0xcf   : > { %6569 = vmatpush3.bf16.msra.mxu0 %v7392_v56  ;;  %v7447_v56 = vld [vmem:[%s8324_s11 + $0x2f8] sm:$0xff]  }
  0xd0   : > { %6570 = vmatprep.subr.bf16.mxu0 %v7394_v59  ;;  %6591 = vmatpush3.bf16.msra.mxu1 %v7393_v58  ;;  %v1358_v58 = vcombine.high %v8449_v54, %v8449_v54  ;;  %v7448_v59 = vld [vmem:[%s8324_s11 + $0x238] sm:$0xff]  }
  0xd1   : > { %6592 = vmatprep.subr.bf16.mxu1 %v7395_v60  ;;  %v7449_v60 = vld [vmem:[%s8324_s11 + $0x2b8] sm:$0xff]  }
  0xd3   : > { %6571 = vmatpush3.bf16.msra.mxu0 %v7396_v61  ;;  %v1389_v61 = vcombine.high %v1379_v57, %v1379_v57 }
  0xd4   : > { %6572 = vmatprep.subr.bf16.mxu0 %v7398_v63  ;;  %6593 = vmatpush3.bf16.msra.mxu1 %v7397_v62  ;;  %v1365_v62 = vrot.slane %v1349_v49, %v8375_v42  ;;  %v7450_v63 = vld [vmem:[%s8324_s11 + $0x340] sm:$0xff]   ;;  %v7495_v49 = vld [vmem:[%s8324_s11 + $0x458] sm:$0xff]  }
  0xd5   : > { %6594 = vmatprep.subr.bf16.mxu1 %v7399_v0  ;;  %v7451_v0 = vld [vmem:[%s8324_s11 + $0x3c0] sm:$0xff]  }
  0xd7   : > { %6573 = vmatpush3.bf16.msra.mxu0 %v7400_v1  ;;  %v1386_v1 = vrot.slane %v1358_v58, %v8375_v42  ;;  %v7504_v58 = vld [vmem:[%s8324_s11 + $0x4e8] sm:$0xff]  }
  0xd8   : > { %6574 = vmatprep.subr.bf16.mxu0 %v7402_v3  ;;  %6595 = vmatpush3.bf16.msra.mxu1 %v7401_v2  ;;  %v7452_v2 = vld [vmem:[%s8324_s11 + $0x300] sm:$0xff]  }
  0xd9   : > { %6596 = vmatprep.subr.bf16.mxu1 %v7403_v4  ;;  %v7453_v3 = vld [vmem:[%s8324_s11 + $0x380] sm:$0xff]   ;;  %v1387_v4 = vcombine.high %v1365_v62, %v1365_v62 }
  0xdb   : > { %6575 = vmatpush3.bf16.msra.mxu0 %v7404_v5  ;;  %v7454_v5 = vld [vmem:[%s8324_s11 + $0x348] sm:$0xff]  }
  0xdc   : > { %6576 = vmatprep.subr.bf16.mxu0 %v7406_v7  ;;  %6597 = vmatpush3.bf16.msra.mxu1 %v7405_v6  ;;  %v7455_v6 = vld [vmem:[%s8324_s11 + $0x3c8] sm:$0xff]   ;;  %v1390_v7 = vcombine.high %v1386_v1, %v1386_v1 }
  0xdd   : > { %6598 = vmatprep.subr.bf16.mxu1 %v7407_v8  ;;  %v7456_v8 = vld [vmem:[%s8324_s11 + $0x308] sm:$0xff]  }
  0xdf   : > { %6577 = vmatpush3.bf16.msra.mxu0 %v7408_v9  ;;  %v7457_v9 = vld [vmem:[%s8324_s11 + $0x388] sm:$0xff]  }
  0xe0   : > { %6578 = vmatprep.subr.bf16.mxu0 %v7410_v11  ;;  %6599 = vmatpush3.bf16.msra.mxu1 %v7409_v10  ;;  %v7458_v10 = vld [vmem:[%s8324_s11 + $0x350] sm:$0xff]  }
  0xe1   : > { %6600 = vmatprep.subr.bf16.mxu1 %v7411_v12  ;;  %v7459_v11 = vld [vmem:[%s8324_s11 + $0x3d0] sm:$0xff]  }
  0xe2   : > { %v7460_v12 = vld [vmem:[%s8324_s11 + $0x310] sm:$0xff]  }
  0xe3   : > { %6579 = vmatpush3.bf16.msra.mxu0 %v7412_v13  ;;  %v7461_v13 = vld [vmem:[%s8324_s11 + $0x390] sm:$0xff]  }
  0xe4   : > { %6580 = vmatprep.subr.bf16.mxu0 %v7414_v15  ;;  %6601 = vmatpush3.bf16.msra.mxu1 %v7413_v14  ;;  %v7462_v14 = vld [vmem:[%s8324_s11 + $0x358] sm:$0xff]  }
  0xe5   : > { %6602 = vmatprep.subr.bf16.mxu1 %v7415_v16  ;;  %v7463_v15 = vld [vmem:[%s8324_s11 + $0x3d8] sm:$0xff]  }
  0xe6   : > { %v7464_v16 = vld [vmem:[%s8324_s11 + $0x318] sm:$0xff]  }
  0xe7   : > { %6581 = vmatpush3.bf16.msra.mxu0 %v7416_v17  ;;  %v7465_v17 = vld [vmem:[%s8324_s11 + $0x398] sm:$0xff]  }
  0xe8   : > { %6610 = vmatprep.subr.bf16.mxu0 %v7418_v20  ;;  %6603 = vmatpush3.bf16.msra.mxu1 %v7417_v18  ;;  %v7466_v18 = vld [vmem:[%s8324_s11 + $0x360] sm:$0xff]  }
  0xe9   : > { %6632 = vmatprep.subr.bf16.mxu1 %v7419_v21  ;;  %v7468_v20 = vld [vmem:[%s8324_s11 + $0x320] sm:$0xff]  }
  0xea   : > { %4713 = vmatmul.mubr.bf16.vlgmr.msra.gmra.mrb[4].mxu0 %v1323_v19  ;;  %v7467_v19 = vld [vmem:[%s8324_s11 + $0x3e0] sm:$0xff]  }
  0xeb   : > { %6611 = vmatpush3.bf16.msra.mxu0 %v7420_v22  ;;  %4753 = vmatmul.mubr.bf16.vlgmr.msra.gmra.mrb[4].mxu1 %v1339_v24  ;;  %v7469_v21 = vld [vmem:[%s8324_s11 + $0x3a0] sm:$0xff]   ;;  %v7470_v22 = vld [vmem:[%s8324_s11 + $0x368] sm:$0xff]  }
  0xec   : > { %6612 = vmatprep.subr.bf16.mxu0 %v7422_v25  ;;  %6633 = vmatpush3.bf16.msra.mxu1 %v7421_v23  ;;  %v7471_v23 = vld [vmem:[%s8324_s11 + $0x3e8] sm:$0xff]  }
  0xed   : > { %6634 = vmatprep.subr.bf16.mxu1 %v7423_v26  ;;  %4792 = vmatprep.mubr.bf16.mxu0 %v1379_v57  ;;  %v7472_v24 = vld [vmem:[%s8324_s11 + $0x328] sm:$0xff]   ;;  %v7474_v26 = vld [vmem:[%s8324_s11 + $0x370] sm:$0xff]  }
  0xee   : > { %4832 = vmatprep.mubr.bf16.mxu1 %v1389_v61  ;;  %v7473_v25 = vld [vmem:[%s8324_s11 + $0x3a8] sm:$0xff]   ;;  %v7507_v61 = vld [vmem:[%s8324_s11 + $0x470] sm:$0xff]  }
  0xef   : > { %6613 = vmatpush3.bf16.msra.mxu0 %v7424_v27  ;;  %v7475_v27 = vld [vmem:[%s8324_s11 + $0x3f0] sm:$0xff]   ;;  %v7503_v57 = vld [vmem:[%s8324_s11 + $0x468] sm:$0xff]  }
  0xf0   : > { %6614 = vmatprep.subr.bf16.mxu0 %v7426_v29  ;;  %6635 = vmatpush3.bf16.msra.mxu1 %v7425_v28  ;;  %v7476_v28 = vld [vmem:[%s8324_s11 + $0x330] sm:$0xff]  }
  0xf1   : > { %6636 = vmatprep.subr.bf16.mxu1 %v7427_v30  ;;  %v7477_v29 = vld [vmem:[%s8324_s11 + $0x3b0] sm:$0xff]   ;;  %v7478_v30 = vld [vmem:[%s8324_s11 + $0x378] sm:$0xff]  }
  0xf3   : > { %6615 = vmatpush3.bf16.msra.mxu0 %v7428_v31  ;;  %v7479_v31 = vld [vmem:[%s8324_s11 + $0x3f8] sm:$0xff]  }
  0xf4   : > { %6616 = vmatprep.subr.bf16.mxu0 %v7430_v33  ;;  %6637 = vmatpush3.bf16.msra.mxu1 %v7429_v32  ;;  %v7480_v32 = vld [vmem:[%s8324_s11 + $0x338] sm:$0xff]  }
  0xf5   : > { %6638 = vmatprep.subr.bf16.mxu1 %v7431_v34  ;;  %v7481_v33 = vld [vmem:[%s8324_s11 + $0x3b8] sm:$0xff]   ;;  %v1372_v34 = vrot.slane %v8449_v54, %v8375_v42  ;;  %v7500_v54 = vld [vmem:[%s8324_s11 + $0x4e0] sm:$0xff]  }
  0xf7   : > { %6617 = vmatpush3.bf16.msra.mxu0 %v7432_v35  ;;  %v7483_v35 = vld [vmem:[%s8324_s11 + $0x440] sm:$0xff]  }
  0xf8   : > { %6618 = vmatprep.subr.bf16.mxu0 %v7434_v37  ;;  %6639 = vmatpush3.bf16.msra.mxu1 %v7433_v36  ;;  %v7484_v36 = vld [vmem:[%s8324_s11 + $0x4c0] sm:$0xff]  }
  0xf9   : > { %6640 = vmatprep.subr.bf16.mxu1 %v7435_v38  ;;  %v7485_v37 = vld [vmem:[%s8324_s11 + $0x400] sm:$0xff]  }
  0xfa   : > { %v7486_v38 = vld [vmem:[%s8324_s11 + $0x480] sm:$0xff]  }
  0xfb   : > { %6619 = vmatpush3.bf16.msra.mxu0 %v7436_v39  ;;  %v1388_v39 = vcombine.high %v1372_v34, %v1372_v34 }
  0xfc   : > { %6620 = vmatprep.subr.bf16.mxu0 %v7438_v41  ;;  %6641 = vmatpush3.bf16.msra.mxu1 %v7437_v40  ;;  %v7487_v40 = vld [vmem:[%s8324_s11 + $0x448] sm:$0xff]  }
  0xfd   : > { %6642 = vmatprep.subr.bf16.mxu1 %v7439_v43  ;;  %v7488_v41 = vld [vmem:[%s8324_s11 + $0x4c8] sm:$0xff]  }
  0xfe   : > { %v7489_v43 = vld [vmem:[%s8324_s11 + $0x408] sm:$0xff]  }
  0xff   : > { %6621 = vmatpush3.bf16.msra.mxu0 %v7440_v44  ;;  %v7490_v44 = vld [vmem:[%s8324_s11 + $0x488] sm:$0xff]  }
 0x100   : > { %6622 = vmatprep.subr.bf16.mxu0 %v7442_v46  ;;  %6643 = vmatpush3.bf16.msra.mxu1 %v7441_v45  ;;  %v7491_v45 = vld [vmem:[%s8324_s11 + $0x450] sm:$0xff]  }
 0x101   : > { %6644 = vmatprep.subr.bf16.mxu1 %v7443_v48  ;;  %v7492_v46 = vld [vmem:[%s8324_s11 + $0x4d0] sm:$0xff]  }
 0x102   : > { %v7494_v48 = vld [vmem:[%s8324_s11 + $0x490] sm:$0xff]  }
 0x103   : > { %6623 = vmatpush3.bf16.msra.mxu0 %v7444_v51  ;;  %v7497_v51 = vld [vmem:[%s8324_s11 + $0x418] sm:$0xff]  }
 0x104   : > { %6624 = vmatprep.subr.bf16.mxu0 %v7446_v55  ;;  %6645 = vmatpush3.bf16.msra.mxu1 %v7445_v52  ;;  %v7498_v52 = vld [vmem:[%s8324_s11 + $0x498] sm:$0xff]   ;;  %v7501_v55 = vld [vmem:[%s8324_s11 + $0x420] sm:$0xff]  }
 0x105   : > { %6646 = vmatprep.subr.bf16.mxu1 %v7447_v56  ;;  %v7502_v56 = vld [vmem:[%s8324_s11 + $0x4a0] sm:$0xff]  }
 0x107   : > { %6625 = vmatpush3.bf16.msra.mxu0 %v7448_v59  ;;  %v7505_v59 = vld [vmem:[%s8324_s11 + $0x428] sm:$0xff]  }
 0x108   : > { %6654 = vmatprep.subr.bf16.mxu0 %v7450_v63  ;;  %6647 = vmatpush3.bf16.msra.mxu1 %v7449_v60  ;;  %v7506_v60 = vld [vmem:[%s8324_s11 + $0x4a8] sm:$0xff]   ;;  %v7508_v63 = vld [vmem:[%s8324_s11 + $0x4f0] sm:$0xff]  }
 0x109   : > { %6676 = vmatprep.subr.bf16.mxu1 %v7451_v0 }
 0x10a   : > { %4793 = vmatmul.mubr.bf16.vlgmr.msra.gmra.mrb[8].mxu0 %v1365_v62  ;;  %v319_v62 = vld [vmem:[%s8317_s13 + $0x10] sm:$0xff] }
 0x10b   : > { %6655 = vmatpush3.bf16.msra.mxu0 %v7452_v2  ;;  %4872 = vmatprep.mubr.bf16.mxu0 %v1386_v1  ;;  %v1398_v0 = vrot.slane %v319_v62, %v8375_v42  ;;  %v1391_v1 = vcombine.high %v319_v62, %v319_v62  ;;  %v7509_v2 = vld [vmem:[%s8324_s11 + $0x430] sm:$0xff]  }
 0x10c   : > { %4833 = vmatmul.mubr.bf16.vlgmr.msra.gmra.mrb[8].mxu1 %v1387_v4  ;;  %6656 = vmatprep.subr.bf16.mxu0 %v7454_v5  ;;  %v7558_v62 = vld [vmem:[%s8324_s11 + $0x610] sm:$0xff]  }
 0x10d   : > { %6677 = vmatpush3.bf16.msra.mxu1 %v7453_v3  ;;  %4912 = vmatprep.mubr.bf16.mxu1 %v1390_v7  ;;  %v7510_v3 = vld [vmem:[%s8324_s11 + $0x4b0] sm:$0xff]   ;;  %v1406_v4 = vcombine.high %v1398_v0, %v1398_v0  ;;  %v8525_v5 = vrot.slane %v1391_v1, %v8375_v42  ;;  %v7512_v7 = vld [vmem:[%s8324_s11 + $0x4f8] sm:$0xff]  }
 0x10e   : > { %6678 = vmatprep.subr.bf16.mxu1 %v7455_v6  ;;  %v7511_v6 = vld [vmem:[%s8324_s11 + $0x478] sm:$0xff]  }
 0x10f   : > { %6657 = vmatpush3.bf16.msra.mxu0 %v7456_v8  ;;  %v1428_v8 = vrot.slane %v1406_v4, %v8375_v42  ;;  %v7561_v1 = vld [vmem:[%s8324_s11 + $0x6d8] sm:$0xff]   ;;  %v7564_v4 = vld [vmem:[%s8324_s11 + $0x660] sm:$0xff]  }
 0x110   : > { %6658 = vmatprep.subr.bf16.mxu0 %v7458_v10  ;;  %v7513_v10 = vld [vmem:[%s8324_s11 + $0x438] sm:$0xff]  }
 0x111   : > { %6679 = vmatpush3.bf16.msra.mxu1 %v7457_v9  ;;  %v1407_v9 = vcombine.high %v8525_v5, %v8525_v5 }
 0x112   : > { %6680 = vmatprep.subr.bf16.mxu1 %v7459_v11  ;;  %v7514_v11 = vld [vmem:[%s8324_s11 + $0x4b8] sm:$0xff]  }
 0x113   : > { %6659 = vmatpush3.bf16.msra.mxu0 %v7460_v12  ;;  %v1438_v12 = vcombine.high %v1428_v8, %v1428_v8 }
 0x114   : > { %6660 = vmatprep.subr.bf16.mxu0 %v7462_v14  ;;  %v7515_v14 = vld [vmem:[%s8324_s11 + $0x540] sm:$0xff]  }
 0x115   : > { %6681 = vmatpush3.bf16.msra.mxu1 %v7461_v13  ;;  %v1414_v13 = vrot.slane %v1398_v0, %v8375_v42  ;;  %v7560_v0 = vld [vmem:[%s8324_s11 + $0x658] sm:$0xff]  }
 0x116   : > { %6682 = vmatprep.subr.bf16.mxu1 %v7463_v15  ;;  %v7516_v15 = vld [vmem:[%s8324_s11 + $0x5c0] sm:$0xff]  }
 0x117   : > { %6661 = vmatpush3.bf16.msra.mxu0 %v7464_v16  ;;  %v1435_v16 = vrot.slane %v1407_v9, %v8375_v42  ;;  %v7569_v9 = vld [vmem:[%s8324_s11 + $0x6e8] sm:$0xff]  }
 0x118   : > { %6662 = vmatprep.subr.bf16.mxu0 %v7466_v18  ;;  %v7518_v18 = vld [vmem:[%s8324_s11 + $0x580] sm:$0xff]  }
 0x119   : > { %6683 = vmatpush3.bf16.msra.mxu1 %v7465_v17  ;;  %v7517_v17 = vld [vmem:[%s8324_s11 + $0x500] sm:$0xff]  }
 0x11a   : > { %6684 = vmatprep.subr.bf16.mxu1 %v7467_v19  ;;  %v1436_v19 = vcombine.high %v1414_v13, %v1414_v13 }
 0x11b   : > { %6663 = vmatpush3.bf16.msra.mxu0 %v7468_v20  ;;  %v7519_v20 = vld [vmem:[%s8324_s11 + $0x548] sm:$0xff]  }
 0x11c   : > { %6664 = vmatprep.subr.bf16.mxu0 %v7470_v22  ;;  %v1439_v22 = vcombine.high %v1435_v16, %v1435_v16 }
 0x11d   : > { %6685 = vmatpush3.bf16.msra.mxu1 %v7469_v21  ;;  %v7520_v21 = vld [vmem:[%s8324_s11 + $0x5c8] sm:$0xff]  }
 0x11e   : > { %6686 = vmatprep.subr.bf16.mxu1 %v7471_v23  ;;  %v7521_v23 = vld [vmem:[%s8324_s11 + $0x508] sm:$0xff]  }
 0x11f   : > { %6665 = vmatpush3.bf16.msra.mxu0 %v7472_v24  ;;  %v7522_v24 = vld [vmem:[%s8324_s11 + $0x588] sm:$0xff]  }
 0x120   : > { %6666 = vmatprep.subr.bf16.mxu0 %v7474_v26  ;;  %v7524_v26 = vld [vmem:[%s8324_s11 + $0x5d0] sm:$0xff]  }
 0x121   : > { %6687 = vmatpush3.bf16.msra.mxu1 %v7473_v25  ;;  %v7523_v25 = vld [vmem:[%s8324_s11 + $0x550] sm:$0xff]  }
 0x122   : > { %6688 = vmatprep.subr.bf16.mxu1 %v7475_v27  ;;  %v7525_v27 = vld [vmem:[%s8324_s11 + $0x510] sm:$0xff]  }
 0x123   : > { %6667 = vmatpush3.bf16.msra.mxu0 %v7476_v28  ;;  %v7526_v28 = vld [vmem:[%s8324_s11 + $0x590] sm:$0xff]  }
 0x124   : > { %6668 = vmatprep.subr.bf16.mxu0 %v7478_v30  ;;  %v7528_v30 = vld [vmem:[%s8324_s11 + $0x5d8] sm:$0xff]  }
 0x125   : > { %6689 = vmatpush3.bf16.msra.mxu1 %v7477_v29  ;;  %v7527_v29 = vld [vmem:[%s8324_s11 + $0x558] sm:$0xff]  }
 0x126   : > { %6690 = vmatprep.subr.bf16.mxu1 %v7479_v31  ;;  %v7529_v31 = vld [vmem:[%s8324_s11 + $0x518] sm:$0xff]  }
 0x127   : > { %6669 = vmatpush3.bf16.msra.mxu0 %v7480_v32  ;;  %v7530_v32 = vld [vmem:[%s8324_s11 + $0x598] sm:$0xff]  }
 0x128   : > { %6698 = vmatprep.subr.bf16.mxu0 %v7483_v35  ;;  %v7533_v35 = vld [vmem:[%s8324_s11 + $0x520] sm:$0xff]  }
 0x129   : > { %6691 = vmatpush3.bf16.msra.mxu1 %v7481_v33  ;;  %v7531_v33 = vld [vmem:[%s8324_s11 + $0x560] sm:$0xff]  }
 0x12a   : > { %4873 = vmatmul.mubr.bf16.vlgmr.msra.gmra.mrb[12].mxu0 %v1372_v34  ;;  %6720 = vmatprep.subr.bf16.mxu1 %v7484_v36  ;;  %v7532_v34 = vld [vmem:[%s8324_s11 + $0x5e0] sm:$0xff]  }
 0x12b   : > { %6699 = vmatpush3.bf16.msra.mxu0 %v7485_v37  ;;  %4952 = vmatprep.mubr.bf16.mxu0 %v1428_v8  ;;  %v7534_v36 = vld [vmem:[%s8324_s11 + $0x5a0] sm:$0xff]   ;;  %v7535_v37 = vld [vmem:[%s8324_s11 + $0x568] sm:$0xff]  }
 0x12c   : > { %4913 = vmatmul.mubr.bf16.vlgmr.msra.gmra.mrb[12].mxu1 %v1388_v39  ;;  %6700 = vmatprep.subr.bf16.mxu0 %v7487_v40  ;;  %v7537_v39 = vld [vmem:[%s8324_s11 + $0x528] sm:$0xff]  }
 0x12d   : > { %6721 = vmatpush3.bf16.msra.mxu1 %v7486_v38  ;;  %4992 = vmatprep.mubr.bf16.mxu1 %v1438_v12  ;;  %v7536_v38 = vld [vmem:[%s8324_s11 + $0x5e8] sm:$0xff]   ;;  %v7572_v12 = vld [vmem:[%s8324_s11 + $0x670] sm:$0xff]  }
 0x12e   : > { %6722 = vmatprep.subr.bf16.mxu1 %v7488_v41  ;;  %v7538_v40 = vld [vmem:[%s8324_s11 + $0x5a8] sm:$0xff]   ;;  %v7539_v41 = vld [vmem:[%s8324_s11 + $0x570] sm:$0xff]  }
 0x12f   : > { %6701 = vmatpush3.bf16.msra.mxu0 %v7489_v43  ;;  %v7540_v43 = vld [vmem:[%s8324_s11 + $0x5f0] sm:$0xff]   ;;  %v7568_v8 = vld [vmem:[%s8324_s11 + $0x668] sm:$0xff]  }
 0x130   : > { %6702 = vmatprep.subr.bf16.mxu0 %v7491_v45  ;;  %v7542_v45 = vld [vmem:[%s8324_s11 + $0x5b0] sm:$0xff]  }
 0x131   : > { %6723 = vmatpush3.bf16.msra.mxu1 %v7490_v44  ;;  %v7541_v44 = vld [vmem:[%s8324_s11 + $0x530] sm:$0xff]  }
 0x132   : > { %6724 = vmatprep.subr.bf16.mxu1 %v7492_v46  ;;  %v7543_v46 = vld [vmem:[%s8324_s11 + $0x578] sm:$0xff]  }
 0x133   : > { %6703 = vmatpush3.bf16.msra.mxu0 %v7493_v47  ;;  %v7544_v47 = vld [vmem:[%s8324_s11 + $0x5f8] sm:$0xff]  }
 0x134   : > { %6704 = vmatprep.subr.bf16.mxu0 %v7495_v49  ;;  %v7546_v49 = vld [vmem:[%s8324_s11 + $0x5b8] sm:$0xff]  }
 0x135   : > { %6725 = vmatpush3.bf16.msra.mxu1 %v7494_v48  ;;  %v7545_v48 = vld [vmem:[%s8324_s11 + $0x538] sm:$0xff]  }
 0x136   : > { %6726 = vmatprep.subr.bf16.mxu1 %v7496_v50  ;;  %v1421_v50 = vrot.slane %v8525_v5, %v8375_v42  ;;  %v7565_v5 = vld [vmem:[%s8324_s11 + $0x6e0] sm:$0xff]  }
 0x137   : > { %6705 = vmatpush3.bf16.msra.mxu0 %v7497_v51  ;;  %v7548_v51 = vld [vmem:[%s8324_s11 + $0x640] sm:$0xff]  }
 0x138   : > { %6706 = vmatprep.subr.bf16.mxu0 %v7499_v53  ;;  %v7550_v53 = vld [vmem:[%s8324_s11 + $0x600] sm:$0xff]  }
 0x139   : > { %6727 = vmatpush3.bf16.msra.mxu1 %v7498_v52  ;;  %v7549_v52 = vld [vmem:[%s8324_s11 + $0x6c0] sm:$0xff]  }
 0x13a   : > { %6728 = vmatprep.subr.bf16.mxu1 %v7500_v54  ;;  %v7551_v54 = vld [vmem:[%s8324_s11 + $0x680] sm:$0xff]  }
 0x13b   : > { %6707 = vmatpush3.bf16.msra.mxu0 %v7501_v55  ;;  %v1437_v55 = vcombine.high %v1421_v50, %v1421_v50 }
 0x13c   : > { %6708 = vmatprep.subr.bf16.mxu0 %v7503_v57  ;;  %v7553_v57 = vld [vmem:[%s8324_s11 + $0x6c8] sm:$0xff]  }
 0x13d   : > { %6729 = vmatpush3.bf16.msra.mxu1 %v7502_v56  ;;  %v7552_v56 = vld [vmem:[%s8324_s11 + $0x648] sm:$0xff]  }
 0x13e   : > { %6730 = vmatprep.subr.bf16.mxu1 %v7504_v58  ;;  %v7554_v58 = vld [vmem:[%s8324_s11 + $0x608] sm:$0xff]  }
 0x13f   : > { %6709 = vmatpush3.bf16.msra.mxu0 %v7505_v59  ;;  %v7555_v59 = vld [vmem:[%s8324_s11 + $0x688] sm:$0xff]  }
 0x140   : > { %6710 = vmatprep.subr.bf16.mxu0 %v7507_v61  ;;  %v7557_v61 = vld [vmem:[%s8324_s11 + $0x6d0] sm:$0xff]  }
 0x141   : > { %6731 = vmatpush3.bf16.msra.mxu1 %v7506_v60  ;;  %v7556_v60 = vld [vmem:[%s8324_s11 + $0x650] sm:$0xff]  }
 0x142   : > { %6732 = vmatprep.subr.bf16.mxu1 %v7508_v63  ;;  %v7559_v63 = vld [vmem:[%s8324_s11 + $0x690] sm:$0xff]  }
 0x143   : > { %6711 = vmatpush3.bf16.msra.mxu0 %v7509_v2  ;;  %v7562_v2 = vld [vmem:[%s8324_s11 + $0x618] sm:$0xff]  }
 0x144   : > { %6712 = vmatprep.subr.bf16.mxu0 %v7511_v6  ;;  %v7566_v6 = vld [vmem:[%s8324_s11 + $0x620] sm:$0xff]  }
 0x145   : > { %6733 = vmatpush3.bf16.msra.mxu1 %v7510_v3  ;;  %v7563_v3 = vld [vmem:[%s8324_s11 + $0x698] sm:$0xff]  }
 0x146   : > { %6734 = vmatprep.subr.bf16.mxu1 %v7512_v7  ;;  %v7567_v7 = vld [vmem:[%s8324_s11 + $0x6a0] sm:$0xff]  }
 0x147   : > { %6713 = vmatpush3.bf16.msra.mxu0 %v7513_v10  ;;  %v7570_v10 = vld [vmem:[%s8324_s11 + $0x628] sm:$0xff]  }
 0x148   : > { %6742 = vmatprep.subr.bf16.mxu0 %v7515_v14  ;;  %v320_v14 = vld [vmem:[%s8317_s13 + $0x18] sm:$0xff] }
 0x149   : > { %6735 = vmatpush3.bf16.msra.mxu1 %v7514_v11  ;;  %v7571_v11 = vld [vmem:[%s8324_s11 + $0x6a8] sm:$0xff]  }
 0x14a   : > { %4953 = vmatmul.mubr.bf16.vlgmr.msra.gmra.mrb[16].mxu0 %v1414_v13  ;;  %6764 = vmatprep.subr.bf16.mxu1 %v7516_v15  ;;  %v7573_v13 = vld [vmem:[%s8324_s11 + $0x6f0] sm:$0xff]  }
 0x14b   : > { %6743 = vmatpush3.bf16.msra.mxu0 %v7517_v17  ;;  %5032 = vmatprep.mubr.bf16.mxu0 %v1435_v16  ;;  %v7574_v15 = vld [vmem:[%s8324_s11 + $0x630] sm:$0xff]   ;;  %v1447_v16 = vrot.slane %v320_v14, %v8375_v42  ;;  %v1440_v17 = vcombine.high %v320_v14, %v320_v14  ;;  %v7614_v14 = vld [vmem:[%s8324_s11 + $0x8c0] sm:$0xff]  }
 0x14c   : > { %4993 = vmatmul.mubr.bf16.vlgmr.msra.gmra.mrb[16].mxu1 %v1436_v19  ;;  %6744 = vmatprep.subr.bf16.mxu0 %v7519_v20  ;;  %v7576_v19 = vld [vmem:[%s8324_s11 + $0x678] sm:$0xff]  }
 0x14d   : > { %6765 = vmatpush3.bf16.msra.mxu1 %v7518_v18  ;;  %5072 = vmatprep.mubr.bf16.mxu1 %v1439_v22  ;;  %v7575_v18 = vld [vmem:[%s8324_s11 + $0x6b0] sm:$0xff]   ;;  %v1455_v20 = vcombine.high %v1447_v16, %v1447_v16  ;;  %v7577_v22 = vld [vmem:[%s8324_s11 + $0x6f8] sm:$0xff]  }
 0x14e   : > { %6766 = vmatprep.subr.bf16.mxu1 %v7520_v21  ;;  %v8602_v21 = vrot.slane %v1440_v17, %v8375_v42 }
 0x14f   : > { %6745 = vmatpush3.bf16.msra.mxu0 %v7521_v23  ;;  %v7578_v23 = vld [vmem:[%s8324_s11 + $0x638] sm:$0xff]  }
 0x150   : > { %6746 = vmatprep.subr.bf16.mxu0 %v7523_v25  ;;  %v1456_v25 = vcombine.high %v8602_v21, %v8602_v21 }
 0x151   : > { %6767 = vmatpush3.bf16.msra.mxu1 %v7522_v24  ;;  %v1477_v24 = vrot.slane %v1455_v20, %v8375_v42  ;;  %v7619_v20 = vld [vmem:[%s8324_s11 + $0x808] sm:$0xff]  }
 0x152   : > { %6768 = vmatprep.subr.bf16.mxu1 %v7524_v26  ;;  %v7579_v26 = vld [vmem:[%s8324_s11 + $0x6b8] sm:$0xff]  }
 0x153   : > { %6747 = vmatpush3.bf16.msra.mxu0 %v7525_v27  ;;  %v1487_v27 = vcombine.high %v1477_v24, %v1477_v24 }
 0x154   : > { %6748 = vmatprep.subr.bf16.mxu0 %v7527_v29  ;;  %v7580_v29 = vld [vmem:[%s8324_s11 + $0x740] sm:$0xff]  }
 0x155   : > { %6769 = vmatpush3.bf16.msra.mxu1 %v7526_v28  ;;  %v1463_v28 = vrot.slane %v1447_v16, %v8375_v42  ;;  %v7616_v16 = vld [vmem:[%s8324_s11 + $0x880] sm:$0xff]  }
 0x156   : > { %6770 = vmatprep.subr.bf16.mxu1 %v7528_v30  ;;  %v7581_v30 = vld [vmem:[%s8324_s11 + $0x7c0] sm:$0xff]  }
 0x157   : > { %6749 = vmatpush3.bf16.msra.mxu0 %v7529_v31  ;;  %v1484_v31 = vrot.slane %v1456_v25, %v8375_v42  ;;  %v7624_v25 = vld [vmem:[%s8324_s11 + $0x890] sm:$0xff]  }
 0x158   : > { %6750 = vmatprep.subr.bf16.mxu0 %v7531_v33  ;;  %v7583_v33 = vld [vmem:[%s8324_s11 + $0x780] sm:$0xff]  }
 0x159   : > { %6771 = vmatpush3.bf16.msra.mxu1 %v7530_v32  ;;  %v7582_v32 = vld [vmem:[%s8324_s11 + $0x700] sm:$0xff]  }
 0x15a   : > { %6772 = vmatprep.subr.bf16.mxu1 %v7532_v34  ;;  %v1485_v34 = vcombine.high %v1463_v28, %v1463_v28 }
 0x15b   : > { %6751 = vmatpush3.bf16.msra.mxu0 %v7533_v35  ;;  %v7584_v35 = vld [vmem:[%s8324_s11 + $0x748] sm:$0xff]  }
 0x15c   : > { %6752 = vmatprep.subr.bf16.mxu0 %v7535_v37  ;;  %v1488_v37 = vcombine.high %v1484_v31, %v1484_v31 }
 0x15d   : > { %6773 = vmatpush3.bf16.msra.mxu1 %v7534_v36  ;;  %v7585_v36 = vld [vmem:[%s8324_s11 + $0x7c8] sm:$0xff]  }
 0x15e   : > { %6774 = vmatprep.subr.bf16.mxu1 %v7536_v38  ;;  %v7586_v38 = vld [vmem:[%s8324_s11 + $0x708] sm:$0xff]  }
 0x15f   : > { %6753 = vmatpush3.bf16.msra.mxu0 %v7537_v39  ;;  %v7587_v39 = vld [vmem:[%s8324_s11 + $0x788] sm:$0xff]  }
 0x160   : > { %6754 = vmatprep.subr.bf16.mxu0 %v7539_v41  ;;  %v7589_v41 = vld [vmem:[%s8324_s11 + $0x7d0] sm:$0xff]  }
 0x161   : > { %6775 = vmatpush3.bf16.msra.mxu1 %v7538_v40  ;;  %v7588_v40 = vld [vmem:[%s8324_s11 + $0x750] sm:$0xff]  }
 0x162   : > { %6776 = vmatprep.subr.bf16.mxu1 %v7540_v43  ;;  %v7590_v43 = vld [vmem:[%s8324_s11 + $0x710] sm:$0xff]  }
 0x163   : > { %6755 = vmatpush3.bf16.msra.mxu0 %v7541_v44  ;;  %v7591_v44 = vld [vmem:[%s8324_s11 + $0x790] sm:$0xff]  }
 0x164   : > { %6756 = vmatprep.subr.bf16.mxu0 %v7543_v46  ;;  %v7593_v46 = vld [vmem:[%s8324_s11 + $0x7d8] sm:$0xff]  }
 0x165   : > { %6777 = vmatpush3.bf16.msra.mxu1 %v7542_v45  ;;  %v7592_v45 = vld [vmem:[%s8324_s11 + $0x758] sm:$0xff]  }
 0x166   : > { %6778 = vmatprep.subr.bf16.mxu1 %v7544_v47  ;;  %v7594_v47 = vld [vmem:[%s8324_s11 + $0x718] sm:$0xff]  }
 0x167   : > { %6757 = vmatpush3.bf16.msra.mxu0 %v7545_v48  ;;  %v7595_v48 = vld [vmem:[%s8324_s11 + $0x798] sm:$0xff]  }
 0x168   : > { %6786 = vmatprep.subr.bf16.mxu0 %v7548_v51  ;;  %v7598_v51 = vld [vmem:[%s8324_s11 + $0x720] sm:$0xff]  }
 0x169   : > { %6779 = vmatpush3.bf16.msra.mxu1 %v7546_v49  ;;  %v7596_v49 = vld [vmem:[%s8324_s11 + $0x760] sm:$0xff]  }
 0x16a   : > { %5033 = vmatmul.mubr.bf16.vlgmr.msra.gmra.mrb[20].mxu0 %v1421_v50  ;;  %6808 = vmatprep.subr.bf16.mxu1 %v7549_v52  ;;  %v7597_v50 = vld [vmem:[%s8324_s11 + $0x7e0] sm:$0xff]  }
 0x16b   : > { %6787 = vmatpush3.bf16.msra.mxu0 %v7550_v53  ;;  %5112 = vmatprep.mubr.bf16.mxu0 %v1477_v24  ;;  %v7599_v52 = vld [vmem:[%s8324_s11 + $0x7a0] sm:$0xff]   ;;  %v7600_v53 = vld [vmem:[%s8324_s11 + $0x768] sm:$0xff]   ;;  %v7623_v24 = vld [vmem:[%s8324_s11 + $0x810] sm:$0xff]  }
 0x16c   : > { %5073 = vmatmul.mubr.bf16.vlgmr.msra.gmra.mrb[20].mxu1 %v1437_v55  ;;  %6788 = vmatprep.subr.bf16.mxu0 %v7552_v56  ;;  %v7602_v55 = vld [vmem:[%s8324_s11 + $0x728] sm:$0xff]  }
 0x16d   : > { %6809 = vmatpush3.bf16.msra.mxu1 %v7551_v54  ;;  %5152 = vmatprep.mubr.bf16.mxu1 %v1487_v27  ;;  %v7601_v54 = vld [vmem:[%s8324_s11 + $0x7e8] sm:$0xff]   ;;  %v7626_v27 = vld [vmem:[%s8324_s11 + $0x8d8] sm:$0xff]  }
 0x16e   : > { %6810 = vmatprep.subr.bf16.mxu1 %v7553_v57  ;;  %v7603_v56 = vld [vmem:[%s8324_s11 + $0x7a8] sm:$0xff]   ;;  %v7604_v57 = vld [vmem:[%s8324_s11 + $0x770] sm:$0xff]  }
 0x16f   : > { %6789 = vmatpush3.bf16.msra.mxu0 %v7554_v58 }
 0x170   : > { %6790 = vmatprep.subr.bf16.mxu0 %v7556_v60 }
 0x171   : > { %6811 = vmatpush3.bf16.msra.mxu1 %v7555_v59  ;;  %v7605_v59 = vld [vmem:[%s8324_s11 + $0x7f0] sm:$0xff]  }
 0x172   : > { %6812 = vmatprep.subr.bf16.mxu1 %v7557_v61  ;;  %v7606_v61 = vld [vmem:[%s8324_s11 + $0x730] sm:$0xff]  }
 0x173   : > { %6791 = vmatpush3.bf16.msra.mxu0 %v7558_v62 }
 0x174   : > { %6792 = vmatprep.subr.bf16.mxu0 %v7560_v0 }
 0x175   : > { %6813 = vmatpush3.bf16.msra.mxu1 %v7559_v63 }
 0x176   : > { %6814 = vmatprep.subr.bf16.mxu1 %v7561_v1  ;;  %v7607_v1 = vld [vmem:[%s8324_s11 + $0x7b0] sm:$0xff]  }
 0x177   : > { %6793 = vmatpush3.bf16.msra.mxu0 %v7562_v2  ;;  %v7608_v2 = vld [vmem:[%s8324_s11 + $0x778] sm:$0xff]  }
 0x178   : > { %6794 = vmatprep.subr.bf16.mxu0 %v7564_v4 }
 0x179   : > { %6815 = vmatpush3.bf16.msra.mxu1 %v7563_v3 }
 0x17a   : > { %6816 = vmatprep.subr.bf16.mxu1 %v7565_v5 }
 0x17b   : > { %6795 = vmatpush3.bf16.msra.mxu0 %v7566_v6 }
 0x17c   : > { %6796 = vmatprep.subr.bf16.mxu0 %v7568_v8 }
 0x17d   : > { %6817 = vmatpush3.bf16.msra.mxu1 %v7567_v7  ;;  %v7609_v7 = vld [vmem:[%s8324_s11 + $0x7f8] sm:$0xff]  }
 0x17e   : > { %6818 = vmatprep.subr.bf16.mxu1 %v7569_v9  ;;  %v7610_v9 = vld [vmem:[%s8324_s11 + $0x738] sm:$0xff]  }
 0x17f   : > { %6797 = vmatpush3.bf16.msra.mxu0 %v7570_v10 }
 0x180   : > { %6798 = vmatprep.subr.bf16.mxu0 %v7572_v12  ;;  %v1470_v12 = vrot.slane %v8602_v21, %v8375_v42  ;;  %v7620_v21 = vld [vmem:[%s8324_s11 + $0x888] sm:$0xff]  }
 0x181   : > { %6819 = vmatpush3.bf16.msra.mxu1 %v7571_v11  ;;  %v7611_v11 = vld [vmem:[%s8324_s11 + $0x7b8] sm:$0xff]  }
 0x182   : > { %6820 = vmatprep.subr.bf16.mxu1 %v7573_v13  ;;  %v7613_v13 = vld [vmem:[%s8324_s11 + $0x840] sm:$0xff]   ;;  %v1486_v17 = vcombine.high %v1470_v12, %v1470_v12 }
 0x183   : > { %6799 = vmatpush3.bf16.msra.mxu0 %v7574_v15  ;;  %v7615_v15 = vld [vmem:[%s8324_s11 + $0x800] sm:$0xff]  }
 0x184   : > { %6800 = vmatprep.subr.bf16.mxu0 %v7576_v19  ;;  %v7618_v19 = vld [vmem:[%s8324_s11 + $0x8c8] sm:$0xff]  }
 0x185   : > { %6821 = vmatpush3.bf16.msra.mxu1 %v7575_v18  ;;  %v7617_v18 = vld [vmem:[%s8324_s11 + $0x848] sm:$0xff]  }
 0x186   : > { %6822 = vmatprep.subr.bf16.mxu1 %v7577_v22  ;;  %v7621_v22 = vld [vmem:[%s8324_s11 + $0x850] sm:$0xff]  }
 0x187   : > { %6801 = vmatpush3.bf16.msra.mxu0 %v7578_v23  ;;  %v7622_v23 = vld [vmem:[%s8324_s11 + $0x8d0] sm:$0xff]  }
 0x188   : > { %6830 = vmatprep.subr.bf16.mxu0 %v7580_v29  ;;  %v7628_v29 = vld [vmem:[%s8324_s11 + $0x898] sm:$0xff]  }
 0x189   : > { %6823 = vmatpush3.bf16.msra.mxu1 %v7579_v26  ;;  %v7625_v26 = vld [vmem:[%s8324_s11 + $0x858] sm:$0xff]  }
 0x18a   : > { %5113 = vmatmul.mubr.bf16.vlgmr.msra.gmra.mrb[24].mxu0 %v1463_v28  ;;  %6852 = vmatprep.subr.bf16.mxu1 %v7581_v30  ;;  %v7627_v28 = vld [vmem:[%s8324_s11 + $0x818] sm:$0xff]   ;;  %v7629_v30 = vld [vmem:[%s8324_s11 + $0x860] sm:$0xff]  }
 0x18b   : > { %6831 = vmatpush3.bf16.msra.mxu0 %v7582_v32  ;;  %5192 = vmatprep.mubr.bf16.mxu0 %v1484_v31  ;;  %v7630_v31 = vld [vmem:[%s8324_s11 + $0x8e0] sm:$0xff]  }
 0x18c   : > { %5153 = vmatmul.mubr.bf16.vlgmr.msra.gmra.mrb[24].mxu1 %v1485_v34  ;;  %6832 = vmatprep.subr.bf16.mxu0 %v7584_v35  ;;  %v7631_v32 = vld [vmem:[%s8324_s11 + $0x820] sm:$0xff]   ;;  %v7633_v34 = vld [vmem:[%s8324_s11 + $0x868] sm:$0xff]  }
 0x18d   : > { %6853 = vmatpush3.bf16.msra.mxu1 %v7583_v33  ;;  %5232 = vmatprep.mubr.bf16.mxu1 %v1488_v37  ;;  %v7632_v33 = vld [vmem:[%s8324_s11 + $0x8a0] sm:$0xff]   ;;  %v7634_v35 = vld [vmem:[%s8324_s11 + $0x8e8] sm:$0xff]  }
 0x18e   : > { %6854 = vmatprep.subr.bf16.mxu1 %v7585_v36  ;;  %v7635_v36 = vld [vmem:[%s8324_s11 + $0x828] sm:$0xff]  }
 0x18f   : > { %6833 = vmatpush3.bf16.msra.mxu0 %v7586_v38  ;;  %v7636_v37 = vld [vmem:[%s8324_s11 + $0x8a8] sm:$0xff]   ;;  %v7637_v38 = vld [vmem:[%s8324_s11 + $0x870] sm:$0xff]  }
 0x190   : > { %6834 = vmatprep.subr.bf16.mxu0 %v7588_v40  ;;  %v7638_v40 = vld [vmem:[%s8324_s11 + $0x8f0] sm:$0xff]  }
 0x191   : > { %6855 = vmatpush3.bf16.msra.mxu1 %v7587_v39 }
 0x192   : > { %6856 = vmatprep.subr.bf16.mxu1 %v7589_v41  ;;  %v321_v41 = vld [vmem:[%s8317_s13 + $0x20] sm:$0xff] }
 0x193   : > { %6835 = vmatpush3.bf16.msra.mxu0 %v7590_v43 }
 0x194   : > { %6836 = vmatprep.subr.bf16.mxu0 %v7592_v45  ;;  %v1496_v45 = vrot.slane %v321_v41, %v8375_v42 }
 0x195   : > { %6857 = vmatpush3.bf16.msra.mxu1 %v7591_v44  ;;  %v7639_v44 = vld [vmem:[%s8324_s11 + $0x830] sm:$0xff]  }
 0x196   : > { %6858 = vmatprep.subr.bf16.mxu1 %v7593_v46  ;;  %v1489_v46 = vcombine.high %v321_v41, %v321_v41 }
 0x197   : > { %6837 = vmatpush3.bf16.msra.mxu0 %v7594_v47 }
 0x198   : > { %6838 = vmatprep.subr.bf16.mxu0 %v7596_v49 }
 0x199   : > { %6859 = vmatpush3.bf16.msra.mxu1 %v7595_v48 }
 0x19a   : > { %6860 = vmatprep.subr.bf16.mxu1 %v7597_v50 }
 0x19b   : > { %6839 = vmatpush3.bf16.msra.mxu0 %v7598_v51 }
 0x19c   : > { %6840 = vmatprep.subr.bf16.mxu0 %v7600_v53  ;;  %v7641_v53 = vld [vmem:[%s8324_s11 + $0x878] sm:$0xff]  }
 0x19d   : > { %6861 = vmatpush3.bf16.msra.mxu1 %v7599_v52  ;;  %v6538_v58 = vpop.f32.mrb[0].mxu0  ;;  %v7640_v52 = vld [vmem:[%s8324_s11 + $0x8b0] sm:$0xff]  }
 0x19e   : > { %v6539_v60 = vpop.f32.mrb[1].mxu0  ;;  %6862 = vmatprep.subr.bf16.mxu1 %v7601_v54  ;;  %v6560_v62 = vpop.f32.mrb[0].mxu1  ;;  %v1504_v54 = vcombine.high %v1496_v45, %v1496_v45 }
 0x19f   : > { %v6540_v63 = vadd.f32 %v6539_v60, %v6538_v58  ;;  %v6541_v0 = vpop.f32.mrb[2].mxu0  ;;  %6841 = vmatpush3.bf16.msra.mxu0 %v7602_v55  ;;  %v6561_v3 = vpop.f32.mrb[1].mxu1  ;;  %v8680_v55 = vrot.slane %v1489_v46, %v8375_v42 }
 0x1a0   : > { %v6542_v4 = vpop.f32.mrb[3].mxu0  ;;  %6842 = vmatprep.subr.bf16.mxu0 %v7604_v57  ;;  %v6562_v5 = vadd.f32 %v6561_v3, %v6560_v62  ;;  %v6563_v6 = vpop.f32.mrb[2].mxu1  ;;  %v1526_v62 = vrot.slane %v1504_v54, %v8375_v42  ;;  %v1512_v3 = vrot.slane %v1496_v45, %v8375_v42  ;;  %v7679_v54 = vld [vmem:[%s8324_s11 + $0xac0] sm:$0xff]  }
 0x1a1   : > { %6863 = vmatpush3.bf16.msra.mxu1 %v7603_v56  ;;  %v6564_v8 = vpop.f32.mrb[3].mxu1  ;;  %v7645_v4 = vld [vmem:[%s8324_s11 + $0x940] sm:$0xff]  }
 0x1a2   : > { %6864 = vmatprep.subr.bf16.mxu1 %v7605_v59  ;;  %v8643_v10 = vadd.f32 %v6562_v5, %v6540_v63  ;;  %v7642_v59 = vld [vmem:[%s8324_s11 + $0x8f8] sm:$0xff]   ;;  %v1505_v63 = vcombine.high %v8680_v55, %v8680_v55  ;;  %v7646_v5 = vld [vmem:[%s8324_s11 + $0x9c0] sm:$0xff]  }
 0x1a3   : > { %6843 = vmatpush3.bf16.msra.mxu0 %v7606_v61  ;;  %v7643_v61 = vld [vmem:[%s8324_s11 + $0x838] sm:$0xff]   ;;  %v7648_v8 = vld [vmem:[%s8324_s11 + $0x980] sm:$0xff]  }
 0x1a4   : > { %6844 = vmatprep.subr.bf16.mxu0 %v7608_v2  ;;  %v1536_v2 = vcombine.high %v1526_v62, %v1526_v62  ;;  %v1533_v6 = vrot.slane %v1505_v63, %v8375_v42  ;;  %v7687_v63 = vld [vmem:[%s8324_s11 + $0xad0] sm:$0xff]  }
 0x1a5   : > { %6865 = vmatpush3.bf16.msra.mxu1 %v7607_v1  ;;  %v7644_v1 = vld [vmem:[%s8324_s11 + $0x8b8] sm:$0xff]  }
 0x1a6   : > { %6866 = vmatprep.subr.bf16.mxu1 %v7609_v7  ;;  %v7647_v7 = vld [vmem:[%s8324_s11 + $0x900] sm:$0xff]  }
 0x1a7   : > { %6845 = vmatpush3.bf16.msra.mxu0 %v7610_v9  ;;  %v1534_v9 = vcombine.high %v1512_v3, %v1512_v3 }
 0x1a8   : > { %6874 = vmatprep.subr.bf16.mxu0 %v7613_v13  ;;  %v7651_v13 = vld [vmem:[%s8324_s11 + $0x908] sm:$0xff]  }
 0x1a9   : > { %6867 = vmatpush3.bf16.msra.mxu1 %v7611_v11  ;;  %v7650_v11 = vld [vmem:[%s8324_s11 + $0x9c8] sm:$0xff]  }
 0x1aa   : > { %5193 = vmatmul.mubr.bf16.vlgmr.msra.gmra.mrb[28].mxu0 %v1470_v12  ;;  %6896 = vmatprep.subr.bf16.mxu1 %v7614_v14  ;;  %v1537_v12 = vcombine.high %v1533_v6, %v1533_v6  ;;  %v7652_v14 = vld [vmem:[%s8324_s11 + $0x988] sm:$0xff]  }
 0x1ab   : > { %6875 = vmatpush3.bf16.msra.mxu0 %v7615_v15  ;;  %5272 = vmatprep.mubr.bf16.mxu0 %v1526_v62  ;;  %v7653_v15 = vld [vmem:[%s8324_s11 + $0x950] sm:$0xff]  }
 0x1ac   : > { %5233 = vmatmul.mubr.bf16.vlgmr.msra.gmra.mrb[28].mxu1 %v1486_v17  ;;  %6876 = vmatprep.subr.bf16.mxu0 %v7617_v18  ;;  %v7655_v17 = vld [vmem:[%s8324_s11 + $0x910] sm:$0xff]  }
 0x1ad   : > { %6897 = vmatpush3.bf16.msra.mxu1 %v7616_v16  ;;  %5312 = vmatprep.mubr.bf16.mxu1 %v1536_v2  ;;  %v7654_v16 = vld [vmem:[%s8324_s11 + $0x9d0] sm:$0xff]   ;;  %v7690_v2 = vld [vmem:[%s8324_s11 + $0xa58] sm:$0xff]  }
 0x1ae   : > { %6898 = vmatprep.subr.bf16.mxu1 %v7618_v19  ;;  %v7656_v18 = vld [vmem:[%s8324_s11 + $0x990] sm:$0xff]   ;;  %v7657_v19 = vld [vmem:[%s8324_s11 + $0x958] sm:$0xff]  }
 0x1af   : > { %6877 = vmatpush3.bf16.msra.mxu0 %v7619_v20  ;;  %v7658_v20 = vld [vmem:[%s8324_s11 + $0x9d8] sm:$0xff]   ;;  %v7686_v62 = vld [vmem:[%s8324_s11 + $0xa50] sm:$0xff]  }
 0x1b0   : > { %6878 = vmatprep.subr.bf16.mxu0 %v7621_v22  ;;  %v7660_v22 = vld [vmem:[%s8324_s11 + $0x998] sm:$0xff]  }
 0x1b1   : > { %6899 = vmatpush3.bf16.msra.mxu1 %v7620_v21  ;;  %v7659_v21 = vld [vmem:[%s8324_s11 + $0x918] sm:$0xff]  }
 0x1b2   : > { %6900 = vmatprep.subr.bf16.mxu1 %v7622_v23  ;;  %v7661_v23 = vld [vmem:[%s8324_s11 + $0x960] sm:$0xff]  }
 0x1b3   : > { %6879 = vmatpush3.bf16.msra.mxu0 %v7623_v24  ;;  %v7662_v24 = vld [vmem:[%s8324_s11 + $0x9e0] sm:$0xff]  }
 0x1b4   : > { %6880 = vmatprep.subr.bf16.mxu0 %v7625_v26  ;;  %v7664_v26 = vld [vmem:[%s8324_s11 + $0x9a0] sm:$0xff]  }
 0x1b5   : > { %6901 = vmatpush3.bf16.msra.mxu1 %v7624_v25  ;;  %v7663_v25 = vld [vmem:[%s8324_s11 + $0x920] sm:$0xff]  }
 0x1b6   : > { %6902 = vmatprep.subr.bf16.mxu1 %v7626_v27  ;;  %v7665_v27 = vld [vmem:[%s8324_s11 + $0x968] sm:$0xff]  }
 0x1b7   : > { %6881 = vmatpush3.bf16.msra.mxu0 %v7627_v28  ;;  %v7666_v28 = vld [vmem:[%s8324_s11 + $0x9e8] sm:$0xff]  }
 0x1b8   : > { %6882 = vmatprep.subr.bf16.mxu0 %v7629_v30  ;;  %v7668_v30 = vld [vmem:[%s8324_s11 + $0x9a8] sm:$0xff]  }
 0x1b9   : > { %6903 = vmatpush3.bf16.msra.mxu1 %v7628_v29  ;;  %v7667_v29 = vld [vmem:[%s8324_s11 + $0x928] sm:$0xff]  }
 0x1ba   : > { %6904 = vmatprep.subr.bf16.mxu1 %v7630_v31  ;;  %v7669_v31 = vld [vmem:[%s8324_s11 + $0x970] sm:$0xff]  }
 0x1bb   : > { %6883 = vmatpush3.bf16.msra.mxu0 %v7631_v32 }
 0x1bc   : > { %6884 = vmatprep.subr.bf16.mxu0 %v7633_v34 }
 0x1bd   : > { %6905 = vmatpush3.bf16.msra.mxu1 %v7632_v33  ;;  %v6582_v39 = vpop.f32.mrb[4].mxu0  ;;  %v7670_v33 = vld [vmem:[%s8324_s11 + $0x9f0] sm:$0xff]  }
 0x1be   : > { %v6583_v43 = vpop.f32.mrb[5].mxu0  ;;  %6906 = vmatprep.subr.bf16.mxu1 %v7634_v35  ;;  %v6604_v47 = vpop.f32.mrb[4].mxu1  ;;  %v7671_v35 = vld [vmem:[%s8324_s11 + $0x930] sm:$0xff]  }
 0x1bf   : > { %v6584_v48 = vadd.f32 %v6583_v43, %v6582_v39  ;;  %v6585_v49 = vpop.f32.mrb[6].mxu0  ;;  %6885 = vmatpush3.bf16.msra.mxu0 %v7635_v36  ;;  %v6605_v50 = vpop.f32.mrb[5].mxu1  ;;  %v7672_v39 = vld [vmem:[%s8324_s11 + $0x9b0] sm:$0xff]  }
 0x1c0   : > { %v6586_v51 = vpop.f32.mrb[7].mxu0  ;;  %6886 = vmatprep.subr.bf16.mxu0 %v7637_v38  ;;  %v6606_v57 = vadd.f32 %v6605_v50, %v6604_v47  ;;  %v6607_v58 = vpop.f32.mrb[6].mxu1  ;;  %v7674_v47 = vld [vmem:[%s8324_s11 + $0x9f8] sm:$0xff]  }
 0x1c1   : > { %v4715_v56 = vadd.f32 %v6584_v48, %v8643_v10  ;;  %6907 = vmatpush3.bf16.msra.mxu1 %v7636_v37  ;;  %v6608_v60 = vpop.f32.mrb[7].mxu1  ;;  %v7649_v10 = vld [vmem:[%s8324_s11 + $0x948] sm:$0xff]   ;;  %v7675_v49 = vld [vmem:[%s8324_s11 + $0x938] sm:$0xff]  }
 0x1c2   : > { %6908 = vmatprep.subr.bf16.mxu1 %v7638_v40  ;;  %v7673_v40 = vld [vmem:[%s8324_s11 + $0x978] sm:$0xff]   ;;  %v7683_v60 = vld [vmem:[%s8324_s11 + $0xac8] sm:$0xff]  }
 0x1c3   : > { %v8688_v0 = vadd.f32 %v6606_v57, %v4715_v56  ;;  %6887 = vmatpush3.bf16.msra.mxu0 %v7639_v44  ;;  %v7676_v51 = vld [vmem:[%s8324_s11 + $0x9b8] sm:$0xff]   ;;  %v7680_v56 = vld [vmem:[%s8324_s11 + $0xa00] sm:$0xff]  }
 0x1c4   : > { %6888 = vmatprep.subr.bf16.mxu0 %v7641_v53  ;;  %v7678_v53 = vld [vmem:[%s8324_s11 + $0xa40] sm:$0xff]  }
 0x1c5   : > { %6909 = vmatpush3.bf16.msra.mxu1 %v7640_v52  ;;  %v1519_v52 = vrot.slane %v8680_v55, %v8375_v42  ;;  %v7681_v57 = vld [vmem:[%s8324_s11 + $0xa80] sm:$0xff]   ;;  %v7684_v55 = vld [vmem:[%s8324_s11 + $0xa08] sm:$0xff]  }
 0x1c6   : > { %6910 = vmatprep.subr.bf16.mxu1 %v7642_v59  ;;  %v7682_v59 = vld [vmem:[%s8324_s11 + $0xa48] sm:$0xff]  }
 0x1c7   : > { %6889 = vmatpush3.bf16.msra.mxu0 %v7643_v61  ;;  %v1535_v58 = vcombine.high %v1519_v52, %v1519_v52  ;;  %v7685_v61 = vld [vmem:[%s8324_s11 + $0xa88] sm:$0xff]  }
 0x1c8   : > { %6918 = vmatprep.subr.bf16.mxu0 %v7645_v4  ;;  %v7692_v4 = vld [vmem:[%s8324_s11 + $0xa18] sm:$0xff]  }
 0x1c9   : > { %6911 = vmatpush3.bf16.msra.mxu1 %v7644_v1  ;;  %v7689_v1 = vld [vmem:[%s8324_s11 + $0xa90] sm:$0xff]  }
 0x1ca   : > { %5273 = vmatmul.mubr.bf16.vlgmr.msra.gmra.mrb[32].mxu0 %v1512_v3  ;;  %6940 = vmatprep.subr.bf16.mxu1 %v7646_v5  ;;  %v7691_v3 = vld [vmem:[%s8324_s11 + $0xad8] sm:$0xff]  }
 0x1cb   : > { %6919 = vmatpush3.bf16.msra.mxu0 %v7647_v7  ;;  %5352 = vmatprep.mubr.bf16.mxu0 %v1533_v6  ;;  %v7693_v5 = vld [vmem:[%s8324_s11 + $0xa98] sm:$0xff]   ;;  %v7694_v6 = vld [vmem:[%s8324_s11 + $0xa60] sm:$0xff]  }
 0x1cc   : > { %5313 = vmatmul.mubr.bf16.vlgmr.msra.gmra.mrb[32].mxu1 %v1534_v9  ;;  %6920 = vmatprep.subr.bf16.mxu0 %v7649_v10  ;;  %v7695_v7 = vld [vmem:[%s8324_s11 + $0xae0] sm:$0xff]   ;;  %v7698_v10 = vld [vmem:[%s8324_s11 + $0xa68] sm:$0xff]  }
 0x1cd   : > { %6941 = vmatpush3.bf16.msra.mxu1 %v7648_v8  ;;  %5392 = vmatprep.mubr.bf16.mxu1 %v1537_v12  ;;  %v7696_v8 = vld [vmem:[%s8324_s11 + $0xa20] sm:$0xff]   ;;  %v7700_v12 = vld [vmem:[%s8324_s11 + $0xa28] sm:$0xff]  }
 0x1ce   : > { %6942 = vmatprep.subr.bf16.mxu1 %v7650_v11  ;;  %v7697_v9 = vld [vmem:[%s8324_s11 + $0xaa0] sm:$0xff]   ;;  %v7699_v11 = vld [vmem:[%s8324_s11 + $0xae8] sm:$0xff]  }
 0x1cf   : > { %6921 = vmatpush3.bf16.msra.mxu0 %v7651_v13  ;;  %v7701_v13 = vld [vmem:[%s8324_s11 + $0xaa8] sm:$0xff]  }
 0x1d0   : > { %6922 = vmatprep.subr.bf16.mxu0 %v7653_v15 }
 0x1d1   : > { %6943 = vmatpush3.bf16.msra.mxu1 %v7652_v14  ;;  %v7702_v14 = vld [vmem:[%s8324_s11 + $0xa70] sm:$0xff]  }
 0x1d2   : > { %6944 = vmatprep.subr.bf16.mxu1 %v7654_v16  ;;  %v7703_v16 = vld [vmem:[%s8324_s11 + $0xaf0] sm:$0xff]  }
 0x1d3   : > { %6923 = vmatpush3.bf16.msra.mxu0 %v7655_v17 }
 0x1d4   : > { %6924 = vmatprep.subr.bf16.mxu0 %v7657_v19  ;;  %v322_v19 = vld [vmem:[%s8317_s13 + $0x28] sm:$0xff] }
 0x1d5   : > { %6945 = vmatpush3.bf16.msra.mxu1 %v7656_v18  ;;  %v7704_v18 = vld [vmem:[%s8324_s11 + $0xa30] sm:$0xff]  }
 0x1d6   : > { %6946 = vmatprep.subr.bf16.mxu1 %v7658_v20 }
 0x1d7   : > { %6925 = vmatpush3.bf16.msra.mxu0 %v7659_v21 }
 0x1d8   : > { %6926 = vmatprep.subr.bf16.mxu0 %v7661_v23  ;;  %v1545_v23 = vrot.slane %v322_v19, %v8375_v42 }
 0x1d9   : > { %6947 = vmatpush3.bf16.msra.mxu1 %v7660_v22 }
 0x1da   : > { %6948 = vmatprep.subr.bf16.mxu1 %v7662_v24  ;;  %v1538_v24 = vcombine.high %v322_v19, %v322_v19 }
 0x1db   : > { %6927 = vmatpush3.bf16.msra.mxu0 %v7663_v25 }
 0x1dc   : > { %6928 = vmatprep.subr.bf16.mxu0 %v7665_v27  ;;  %v7705_v27 = vld [vmem:[%s8324_s11 + $0xab0] sm:$0xff]  }
 0x1dd   : > { %6949 = vmatpush3.bf16.msra.mxu1 %v7664_v26  ;;  %v6626_v32 = vpop.f32.mrb[8].mxu0 }
 0x1de   : > { %v6627_v34 = vpop.f32.mrb[9].mxu0  ;;  %6950 = vmatprep.subr.bf16.mxu1 %v7666_v28  ;;  %v7706_v28 = vld [vmem:[%s8324_s11 + $0xa78] sm:$0xff]  }
 0x1df   : > { %v6648_v36 = vpop.f32.mrb[8].mxu1  ;;  %v6628_v37 = vadd.f32 %v6627_v34, %v6626_v32  ;;  %v6629_v38 = vpop.f32.mrb[10].mxu0  ;;  %6929 = vmatpush3.bf16.msra.mxu0 %v7667_v29  ;;  %v7707_v32 = vld [vmem:[%s8324_s11 + $0xaf8] sm:$0xff]  }
 0x1e0   : > { %v6649_v41 = vpop.f32.mrb[9].mxu1  ;;  %v6630_v43 = vpop.f32.mrb[11].mxu0  ;;  %6930 = vmatprep.subr.bf16.mxu0 %v7669_v31  ;;  %v7709_v38 = vld [vmem:[%s8324_s11 + $0xab8] sm:$0xff]  }
 0x1e1   : > { %v4795_v44 = vadd.f32 %v6628_v37, %v8688_v0  ;;  %v6650_v45 = vadd.f32 %v6649_v41, %v6648_v36  ;;  %v6651_v46 = vpop.f32.mrb[10].mxu1  ;;  %6951 = vmatpush3.bf16.msra.mxu1 %v7668_v30  ;;  %v7688_v0 = vld [vmem:[%s8324_s11 + $0xa10] sm:$0xff]   ;;  %v8765_v36 = vrot.slane %v1538_v24, %v8375_v42  ;;  %v7710_v41 = vld [vmem:[%s8324_s11 + $0xb40] sm:$0xff]   ;;  %v7740_v24 = vld [vmem:[%s8324_s11 + $0xb38] sm:$0xff]  }
 0x1e2   : > { %v6652_v48 = vpop.f32.mrb[11].mxu1  ;;  %6952 = vmatprep.subr.bf16.mxu1 %v7670_v33  ;;  %v1553_v33 = vcombine.high %v1545_v23, %v1545_v23  ;;  %v7712_v46 = vld [vmem:[%s8324_s11 + $0xb00] sm:$0xff]  }
 0x1e3   : > { %v8725_v50 = vadd.f32 %v6650_v45, %v4795_v44  ;;  %6931 = vmatpush3.bf16.msra.mxu0 %v7671_v35  ;;  %v7708_v35 = vld [vmem:[%s8324_s11 + $0xa38] sm:$0xff]   ;;  %v1554_v43 = vcombine.high %v8765_v36, %v8765_v36  ;;  %v7711_v45 = vld [vmem:[%s8324_s11 + $0xbc0] sm:$0xff]  }
 0x1e4   : > { %6932 = vmatprep.subr.bf16.mxu0 %v7673_v40  ;;  %v1561_v40 = vrot.slane %v1545_v23, %v8375_v42  ;;  %v7713_v48 = vld [vmem:[%s8324_s11 + $0xb80] sm:$0xff]  }
 0x1e5   : > { %6953 = vmatpush3.bf16.msra.mxu1 %v7672_v39  ;;  %v1575_v39 = vrot.slane %v1553_v33, %v8375_v42  ;;  %v7747_v33 = vld [vmem:[%s8324_s11 + $0xc48] sm:$0xff]  }
 0x1e6   : > { %6954 = vmatprep.subr.bf16.mxu1 %v7674_v47  ;;  %v1582_v47 = vrot.slane %v1554_v43, %v8375_v42  ;;  %v7756_v43 = vld [vmem:[%s8324_s11 + $0xcd8] sm:$0xff]  }
 0x1e7   : > { %6933 = vmatpush3.bf16.msra.mxu0 %v7675_v49  ;;  %v1585_v44 = vcombine.high %v1575_v39, %v1575_v39  ;;  %v1583_v49 = vcombine.high %v1561_v40, %v1561_v40 }
 0x1e8   : > { %6962 = vmatprep.subr.bf16.mxu0 %v7678_v53  ;;  %v7716_v53 = vld [vmem:[%s8324_s11 + $0xb08] sm:$0xff]  }
 0x1e9   : > { %6955 = vmatpush3.bf16.msra.mxu1 %v7676_v51  ;;  %v7715_v51 = vld [vmem:[%s8324_s11 + $0xbc8] sm:$0xff]  }
 0x1ea   : > { %5353 = vmatmul.mubr.bf16.vlgmr.msra.gmra.mrb[36].mxu0 %v1519_v52  ;;  %6984 = vmatprep.subr.bf16.mxu1 %v7679_v54  ;;  %v1586_v52 = vcombine.high %v1582_v47, %v1582_v47  ;;  %v7717_v54 = vld [vmem:[%s8324_s11 + $0xb88] sm:$0xff]  }
 0x1eb   : > { %6963 = vmatpush3.bf16.msra.mxu0 %v7680_v56  ;;  %5432 = vmatprep.mubr.bf16.mxu0 %v1575_v39  ;;  %v7718_v56 = vld [vmem:[%s8324_s11 + $0xb50] sm:$0xff]  }
 0x1ec   : > { %5393 = vmatmul.mubr.bf16.vlgmr.msra.gmra.mrb[36].mxu1 %v1535_v58  ;;  %6964 = vmatprep.subr.bf16.mxu0 %v7682_v59  ;;  %v7720_v58 = vld [vmem:[%s8324_s11 + $0xb10] sm:$0xff]  }
 0x1ed   : > { %6985 = vmatpush3.bf16.msra.mxu1 %v7681_v57  ;;  %5472 = vmatprep.mubr.bf16.mxu1 %v1585_v44  ;;  %v7719_v57 = vld [vmem:[%s8324_s11 + $0xbd0] sm:$0xff]   ;;  %v7757_v44 = vld [vmem:[%s8324_s11 + $0xc18] sm:$0xff]  }
 0x1ee   : > { %6986 = vmatprep.subr.bf16.mxu1 %v7683_v60  ;;  %v7721_v59 = vld [vmem:[%s8324_s11 + $0xb90] sm:$0xff]   ;;  %v7722_v60 = vld [vmem:[%s8324_s11 + $0xb58] sm:$0xff]  }
 0x1ef   : > { %6965 = vmatpush3.bf16.msra.mxu0 %v7684_v55  ;;  %v7723_v55 = vld [vmem:[%s8324_s11 + $0xbd8] sm:$0xff]   ;;  %v7753_v39 = vld [vmem:[%s8324_s11 + $0xc10] sm:$0xff]  }
 0x1f0   : > { %6966 = vmatprep.subr.bf16.mxu0 %v7686_v62  ;;  %v7725_v62 = vld [vmem:[%s8324_s11 + $0xb98] sm:$0xff]  }
 0x1f1   : > { %6987 = vmatpush3.bf16.msra.mxu1 %v7685_v61  ;;  %v7724_v61 = vld [vmem:[%s8324_s11 + $0xb18] sm:$0xff]  }
 0x1f2   : > { %6988 = vmatprep.subr.bf16.mxu1 %v7687_v63  ;;  %v7726_v63 = vld [vmem:[%s8324_s11 + $0xb60] sm:$0xff]  }
 0x1f3   : > { %6967 = vmatpush3.bf16.msra.mxu0 %v7688_v0  ;;  %v7727_v0 = vld [vmem:[%s8324_s11 + $0xbe0] sm:$0xff]  }
 0x1f4   : > { %6968 = vmatprep.subr.bf16.mxu0 %v7690_v2  ;;  %v7729_v2 = vld [vmem:[%s8324_s11 + $0xba0] sm:$0xff]  }
 0x1f5   : > { %6989 = vmatpush3.bf16.msra.mxu1 %v7689_v1  ;;  %v7728_v1 = vld [vmem:[%s8324_s11 + $0xb20] sm:$0xff]  }
 0x1f6   : > { %6990 = vmatprep.subr.bf16.mxu1 %v7691_v3  ;;  %v7730_v3 = vld [vmem:[%s8324_s11 + $0xb68] sm:$0xff]  }
 0x1f7   : > { %6969 = vmatpush3.bf16.msra.mxu0 %v7692_v4  ;;  %v7731_v4 = vld [vmem:[%s8324_s11 + $0xbe8] sm:$0xff]  }
 0x1f8   : > { %6970 = vmatprep.subr.bf16.mxu0 %v7694_v6  ;;  %v7733_v6 = vld [vmem:[%s8324_s11 + $0xba8] sm:$0xff]  }
 0x1f9   : > { %6991 = vmatpush3.bf16.msra.mxu1 %v7693_v5  ;;  %v7732_v5 = vld [vmem:[%s8324_s11 + $0xb28] sm:$0xff]  }
 0x1fa   : > { %6992 = vmatprep.subr.bf16.mxu1 %v7695_v7  ;;  %v7734_v7 = vld [vmem:[%s8324_s11 + $0xb70] sm:$0xff]  }
 0x1fb   : > { %6971 = vmatpush3.bf16.msra.mxu0 %v7696_v8 }
 0x1fc   : > { %6972 = vmatprep.subr.bf16.mxu0 %v7698_v10 }
 0x1fd   : > { %6993 = vmatpush3.bf16.msra.mxu1 %v7697_v9  ;;  %v6670_v15 = vpop.f32.mrb[12].mxu0  ;;  %v7735_v9 = vld [vmem:[%s8324_s11 + $0xbf0] sm:$0xff]  }
 0x1fe   : > { %v6671_v17 = vpop.f32.mrb[13].mxu0  ;;  %6994 = vmatprep.subr.bf16.mxu1 %v7699_v11  ;;  %v7736_v11 = vld [vmem:[%s8324_s11 + $0xb30] sm:$0xff]  }
 0x1ff   : > { %v6692_v20 = vpop.f32.mrb[12].mxu1  ;;  %v6672_v21 = vadd.f32 %v6671_v17, %v6670_v15  ;;  %v6673_v22 = vpop.f32.mrb[14].mxu0  ;;  %6973 = vmatpush3.bf16.msra.mxu0 %v7700_v12  ;;  %v7737_v15 = vld [vmem:[%s8324_s11 + $0xbb0] sm:$0xff]  }
 0x200   : > { %v6693_v25 = vpop.f32.mrb[13].mxu1  ;;  %v6674_v26 = vpop.f32.mrb[15].mxu0  ;;  %6974 = vmatprep.subr.bf16.mxu0 %v7702_v14  ;;  %v7739_v22 = vld [vmem:[%s8324_s11 + $0xbf8] sm:$0xff]  }
 0x201   : > { %v4875_v29 = vadd.f32 %v6672_v21, %v8725_v50  ;;  %v6694_v30 = vadd.f32 %v6693_v25, %v6692_v20  ;;  %v6695_v31 = vpop.f32.mrb[14].mxu1  ;;  %6995 = vmatpush3.bf16.msra.mxu1 %v7701_v13  ;;  %v7714_v50 = vld [vmem:[%s8324_s11 + $0xb48] sm:$0xff]   ;;  %v7741_v26 = vld [vmem:[%s8324_s11 + $0xbb8] sm:$0xff]  }
 0x202   : > { %v6696_v34 = vpop.f32.mrb[15].mxu1  ;;  %6996 = vmatprep.subr.bf16.mxu1 %v7703_v16  ;;  %v7738_v16 = vld [vmem:[%s8324_s11 + $0xb78] sm:$0xff]   ;;  %v7746_v31 = vld [vmem:[%s8324_s11 + $0xc80] sm:$0xff]  }
 0x203   : > { %v8767_v37 = vadd.f32 %v6694_v30, %v4875_v29  ;;  %6975 = vmatpush3.bf16.msra.mxu0 %v7704_v18  ;;  %v7744_v29 = vld [vmem:[%s8324_s11 + $0xcc0] sm:$0xff]   ;;  %v7748_v34 = vld [vmem:[%s8324_s11 + $0xcc8] sm:$0xff]  }
 0x204   : > { %6976 = vmatprep.subr.bf16.mxu0 %v7706_v28  ;;  %v7743_v28 = vld [vmem:[%s8324_s11 + $0xc40] sm:$0xff]  }
 0x205   : > { %6997 = vmatpush3.bf16.msra.mxu1 %v7705_v27  ;;  %v1568_v27 = vrot.slane %v8765_v36, %v8375_v42  ;;  %v7745_v30 = vld [vmem:[%s8324_s11 + $0xc00] sm:$0xff]   ;;  %v7750_v36 = vld [vmem:[%s8324_s11 + $0xc88] sm:$0xff]  }
 0x206   : > { %6998 = vmatprep.subr.bf16.mxu1 %v7707_v32 }
 0x207   : > { %6977 = vmatpush3.bf16.msra.mxu0 %v7708_v35  ;;  %v1584_v32 = vcombine.high %v1568_v27, %v1568_v27  ;;  %v7749_v35 = vld [vmem:[%s8324_s11 + $0xc08] sm:$0xff]  }
 0x208   : > { %7006 = vmatprep.subr.bf16.mxu0 %v7710_v41  ;;  %v7755_v41 = vld [vmem:[%s8324_s11 + $0xc58] sm:$0xff]  }
 0x209   : > { %6999 = vmatpush3.bf16.msra.mxu1 %v7709_v38  ;;  %v7752_v38 = vld [vmem:[%s8324_s11 + $0xcd0] sm:$0xff]  }
 0x20a   : > { %5433 = vmatmul.mubr.bf16.vlgmr.msra.gmra.mrb[40].mxu0 %v1561_v40  ;;  %7028 = vmatprep.subr.bf16.mxu1 %v7711_v45  ;;  %v7754_v40 = vld [vmem:[%s8324_s11 + $0xc90] sm:$0xff]   ;;  %v7758_v45 = vld [vmem:[%s8324_s11 + $0xc98] sm:$0xff]  }
 0x20b   : > { %7007 = vmatpush3.bf16.msra.mxu0 %v7712_v46  ;;  %5512 = vmatprep.mubr.bf16.mxu0 %v1582_v47  ;;  %v7759_v46 = vld [vmem:[%s8324_s11 + $0xc60] sm:$0xff]  }
 0x20c   : > { %5473 = vmatmul.mubr.bf16.vlgmr.msra.gmra.mrb[40].mxu1 %v1583_v49  ;;  %7008 = vmatprep.subr.bf16.mxu0 %v7714_v50  ;;  %v7760_v47 = vld [vmem:[%s8324_s11 + $0xce0] sm:$0xff]   ;;  %v7763_v50 = vld [vmem:[%s8324_s11 + $0xc68] sm:$0xff]  }
 0x20d   : > { %7029 = vmatpush3.bf16.msra.mxu1 %v7713_v48  ;;  %5552 = vmatprep.mubr.bf16.mxu1 %v1586_v52  ;;  %v7761_v48 = vld [vmem:[%s8324_s11 + $0xc20] sm:$0xff]   ;;  %v7765_v52 = vld [vmem:[%s8324_s11 + $0xc28] sm:$0xff]  }
 0x20e   : > { %7030 = vmatprep.subr.bf16.mxu1 %v7715_v51  ;;  %v7762_v49 = vld [vmem:[%s8324_s11 + $0xca0] sm:$0xff]   ;;  %v7764_v51 = vld [vmem:[%s8324_s11 + $0xce8] sm:$0xff]  }
 0x20f   : > { %7009 = vmatpush3.bf16.msra.mxu0 %v7716_v53  ;;  %v7766_v53 = vld [vmem:[%s8324_s11 + $0xca8] sm:$0xff]  }
 0x210   : > { %7010 = vmatprep.subr.bf16.mxu0 %v7718_v56 }
 0x211   : > { %7031 = vmatpush3.bf16.msra.mxu1 %v7717_v54  ;;  %v7767_v54 = vld [vmem:[%s8324_s11 + $0xc70] sm:$0xff]  }
 0x212   : > { %7032 = vmatprep.subr.bf16.mxu1 %v7719_v57  ;;  %v7768_v57 = vld [vmem:[%s8324_s11 + $0xcf0] sm:$0xff]  }
 0x213   : > { %7011 = vmatpush3.bf16.msra.mxu0 %v7720_v58 }
 0x214   : > { %7012 = vmatprep.subr.bf16.mxu0 %v7722_v60 }
 0x215   : > { %7033 = vmatpush3.bf16.msra.mxu1 %v7721_v59  ;;  %v7769_v59 = vld [vmem:[%s8324_s11 + $0xc30] sm:$0xff]  }
 0x216   : > { %7034 = vmatprep.subr.bf16.mxu1 %v7723_v55 }
 0x217   : > { %7013 = vmatpush3.bf16.msra.mxu0 %v7724_v61 }
 0x218   : > { %7014 = vmatprep.subr.bf16.mxu0 %v7726_v63  ;;  %v323_v63 = vld [vmem:[%s8317_s13 + $0x30] sm:$0xff] }
 0x219   : > { %7035 = vmatpush3.bf16.msra.mxu1 %v7725_v62  ;;  %v7771_v62 = vld [vmem:[%s8324_s11 + $0xc78] sm:$0xff]  }
 0x21a   : > { %7036 = vmatprep.subr.bf16.mxu1 %v7727_v0 }
 0x21b   : > { %7015 = vmatpush3.bf16.msra.mxu0 %v7728_v1 }
 0x21c   : > { %7016 = vmatprep.subr.bf16.mxu0 %v7730_v3  ;;  %v1587_v3 = vcombine.high %v323_v63, %v323_v63 }
 0x21d   : > { %7037 = vmatpush3.bf16.msra.mxu1 %v7729_v2  ;;  %v6714_v8 = vpop.f32.mrb[16].mxu0  ;;  %v1594_v2 = vrot.slane %v323_v63, %v8375_v42  ;;  %v7804_v63 = vld [vmem:[%s8324_s11 + $0xdf8] sm:$0xff]  }
 0x21e   : > { %v6715_v10 = vpop.f32.mrb[17].mxu0  ;;  %7038 = vmatprep.subr.bf16.mxu1 %v7731_v4 }
 0x21f   : > { %v6736_v12 = vpop.f32.mrb[16].mxu1  ;;  %v6716_v13 = vadd.f32 %v6715_v10, %v6714_v8  ;;  %v6717_v14 = vpop.f32.mrb[18].mxu0  ;;  %7017 = vmatpush3.bf16.msra.mxu0 %v7732_v5  ;;  %v1602_v10 = vcombine.high %v1594_v2, %v1594_v2 }
 0x220   : > { %v6737_v17 = vpop.f32.mrb[17].mxu1  ;;  %v6718_v18 = vpop.f32.mrb[19].mxu0  ;;  %7018 = vmatprep.subr.bf16.mxu0 %v7734_v7  ;;  %v7770_v7 = vld [vmem:[%s8324_s11 + $0xcb0] sm:$0xff]  }
 0x221   : > { %v4955_v19 = vadd.f32 %v6716_v13, %v8767_v37  ;;  %v6738_v20 = vadd.f32 %v6737_v17, %v6736_v12  ;;  %v6739_v21 = vpop.f32.mrb[18].mxu1  ;;  %7039 = vmatpush3.bf16.msra.mxu1 %v7733_v6  ;;  %v7751_v37 = vld [vmem:[%s8324_s11 + $0xc50] sm:$0xff]   ;;  %v7773_v13 = vld [vmem:[%s8324_s11 + $0xc38] sm:$0xff]   ;;  %v1624_v14 = vrot.slane %v1602_v10, %v8375_v42  ;;  %v7813_v10 = vld [vmem:[%s8324_s11 + $0xec8] sm:$0xff]  }
 0x222   : > { %v6740_v23 = vpop.f32.mrb[19].mxu1  ;;  %7040 = vmatprep.subr.bf16.mxu1 %v7735_v9  ;;  %v7772_v9 = vld [vmem:[%s8324_s11 + $0xcf8] sm:$0xff]  }
 0x223   : > { %v8807_v25 = vadd.f32 %v6738_v20, %v4955_v19  ;;  %7019 = vmatpush3.bf16.msra.mxu0 %v7736_v11  ;;  %v8846_v11 = vrot.slane %v1587_v3, %v8375_v42  ;;  %v7774_v18 = vld [vmem:[%s8324_s11 + $0xcb8] sm:$0xff]   ;;  %v1634_v19 = vcombine.high %v1624_v14, %v1624_v14  ;;  %v7776_v20 = vld [vmem:[%s8324_s11 + $0xdc0] sm:$0xff]  }
 0x224   : > { %7020 = vmatprep.subr.bf16.mxu0 %v7738_v16  ;;  %v7775_v16 = vld [vmem:[%s8324_s11 + $0xd40] sm:$0xff]  }
 0x225   : > { %7041 = vmatpush3.bf16.msra.mxu1 %v7737_v15  ;;  %v1610_v15 = vrot.slane %v1594_v2, %v8375_v42  ;;  %v1603_v17 = vcombine.high %v8846_v11, %v8846_v11  ;;  %v1617_v2 = vrot.slane %v8846_v11, %v8375_v42  ;;  %v7808_v3 = vld [vmem:[%s8324_s11 + $0xe40] sm:$0xff]   ;;  %v7814_v11 = vld [vmem:[%s8324_s11 + $0xe08] sm:$0xff]  }
 0x226   : > { %7042 = vmatprep.subr.bf16.mxu1 %v7739_v22  ;;  %v7777_v22 = vld [vmem:[%s8324_s11 + $0xd00] sm:$0xff]  }
 0x227   : > { %7021 = vmatpush3.bf16.msra.mxu0 %v7740_v24  ;;  %v1631_v21 = vrot.slane %v1603_v17, %v8375_v42  ;;  %v1632_v23 = vcombine.high %v1610_v15, %v1610_v15  ;;  %v7779_v24 = vld [vmem:[%s8324_s11 + $0xd48] sm:$0xff]   ;;  %v7819_v17 = vld [vmem:[%s8324_s11 + $0xe90] sm:$0xff]  }
 0x228   : > { %7050 = vmatprep.subr.bf16.mxu0 %v7743_v28  ;;  %v7781_v28 = vld [vmem:[%s8324_s11 + $0xd08] sm:$0xff]  }
 0x229   : > { %7043 = vmatpush3.bf16.msra.mxu1 %v7741_v26  ;;  %v1635_v26 = vcombine.high %v1631_v21, %v1631_v21 }
 0x22a   : > { %5513 = vmatmul.mubr.bf16.vlgmr.msra.gmra.mrb[44].mxu0 %v1568_v27  ;;  %7072 = vmatprep.subr.bf16.mxu1 %v7744_v29  ;;  %v7780_v27 = vld [vmem:[%s8324_s11 + $0xdc8] sm:$0xff]   ;;  %v7783_v29 = vld [vmem:[%s8324_s11 + $0xd50] sm:$0xff]  }
 0x22b   : > { %7051 = vmatpush3.bf16.msra.mxu0 %v7745_v30  ;;  %5592 = vmatprep.mubr.bf16.mxu0 %v1624_v14  ;;  %v7782_v30 = vld [vmem:[%s8324_s11 + $0xd88] sm:$0xff]   ;;  %v7817_v14 = vld [vmem:[%s8324_s11 + $0xed0] sm:$0xff]  }
 0x22c   : > { %5553 = vmatmul.mubr.bf16.vlgmr.msra.gmra.mrb[44].mxu1 %v1584_v32  ;;  %7052 = vmatprep.subr.bf16.mxu0 %v7747_v33  ;;  %v7785_v32 = vld [vmem:[%s8324_s11 + $0xd10] sm:$0xff]   ;;  %v7787_v33 = vld [vmem:[%s8324_s11 + $0xd58] sm:$0xff]  }
 0x22d   : > { %7073 = vmatpush3.bf16.msra.mxu1 %v7746_v31  ;;  %5632 = vmatprep.mubr.bf16.mxu1 %v1634_v19  ;;  %v7784_v31 = vld [vmem:[%s8324_s11 + $0xdd0] sm:$0xff]   ;;  %v7822_v19 = vld [vmem:[%s8324_s11 + $0xe18] sm:$0xff]  }
 0x22e   : > { %7074 = vmatprep.subr.bf16.mxu1 %v7748_v34  ;;  %v7786_v34 = vld [vmem:[%s8324_s11 + $0xd90] sm:$0xff]  }
 0x22f   : > { %7053 = vmatpush3.bf16.msra.mxu0 %v7749_v35  ;;  %v7788_v35 = vld [vmem:[%s8324_s11 + $0xdd8] sm:$0xff]  }
 0x230   : > { %7054 = vmatprep.subr.bf16.mxu0 %v7751_v37  ;;  %v7791_v37 = vld [vmem:[%s8324_s11 + $0xd60] sm:$0xff]  }
 0x231   : > { %7075 = vmatpush3.bf16.msra.mxu1 %v7750_v36  ;;  %v7789_v36 = vld [vmem:[%s8324_s11 + $0xd18] sm:$0xff]  }
 0x232   : > { %7076 = vmatprep.subr.bf16.mxu1 %v7752_v38  ;;  %v7790_v38 = vld [vmem:[%s8324_s11 + $0xd98] sm:$0xff]  }
 0x233   : > { %7055 = vmatpush3.bf16.msra.mxu0 %v7753_v39  ;;  %v7792_v39 = vld [vmem:[%s8324_s11 + $0xde0] sm:$0xff]  }
 0x234   : > { %7056 = vmatprep.subr.bf16.mxu0 %v7755_v41  ;;  %v7795_v41 = vld [vmem:[%s8324_s11 + $0xd68] sm:$0xff]  }
 0x235   : > { %7077 = vmatpush3.bf16.msra.mxu1 %v7754_v40  ;;  %v7793_v40 = vld [vmem:[%s8324_s11 + $0xd20] sm:$0xff]  }
 0x236   : > { %7078 = vmatprep.subr.bf16.mxu1 %v7756_v43  ;;  %v7794_v43 = vld [vmem:[%s8324_s11 + $0xda0] sm:$0xff]  }
 0x237   : > { %7057 = vmatpush3.bf16.msra.mxu0 %v7757_v44  ;;  %v7796_v44 = vld [vmem:[%s8324_s11 + $0xde8] sm:$0xff]  }
 0x238   : > { %7058 = vmatprep.subr.bf16.mxu0 %v7759_v46  ;;  %v7799_v46 = vld [vmem:[%s8324_s11 + $0xd70] sm:$0xff]  }
 0x239   : > { %7079 = vmatpush3.bf16.msra.mxu1 %v7758_v45  ;;  %v7797_v45 = vld [vmem:[%s8324_s11 + $0xd28] sm:$0xff]  }
 0x23a   : > { %7080 = vmatprep.subr.bf16.mxu1 %v7760_v47 }
 0x23b   : > { %7059 = vmatpush3.bf16.msra.mxu0 %v7761_v48  ;;  %v7798_v48 = vld [vmem:[%s8324_s11 + $0xda8] sm:$0xff]  }
 0x23c   : > { %7060 = vmatprep.subr.bf16.mxu0 %v7763_v50  ;;  %v7800_v50 = vld [vmem:[%s8324_s11 + $0xdf0] sm:$0xff]  }
 0x23d   : > { %7081 = vmatpush3.bf16.msra.mxu1 %v7762_v49  ;;  %v6758_v56 = vpop.f32.mrb[20].mxu0 }
 0x23e   : > { %v6759_v58 = vpop.f32.mrb[21].mxu0  ;;  %7082 = vmatprep.subr.bf16.mxu1 %v7764_v51 }
 0x23f   : > { %v6780_v60 = vpop.f32.mrb[20].mxu1  ;;  %v6760_v55 = vadd.f32 %v6759_v58, %v6758_v56  ;;  %v6761_v61 = vpop.f32.mrb[22].mxu0  ;;  %7061 = vmatpush3.bf16.msra.mxu0 %v7765_v52  ;;  %v7803_v56 = vld [vmem:[%s8324_s11 + $0xd78] sm:$0xff]  }
 0x240   : > { %v6781_v0 = vpop.f32.mrb[21].mxu1  ;;  %v6762_v1 = vpop.f32.mrb[23].mxu0  ;;  %7062 = vmatprep.subr.bf16.mxu0 %v7767_v54  ;;  %v7801_v54 = vld [vmem:[%s8324_s11 + $0xd30] sm:$0xff]  }
 0x241   : > { %v5035_v4 = vadd.f32 %v6760_v55, %v8807_v25  ;;  %v6782_v5 = vadd.f32 %v6781_v0, %v6780_v60  ;;  %v6783_v6 = vpop.f32.mrb[22].mxu1  ;;  %7083 = vmatpush3.bf16.msra.mxu1 %v7766_v53  ;;  %v7778_v25 = vld [vmem:[%s8324_s11 + $0xd80] sm:$0xff]   ;;  %v7802_v61 = vld [vmem:[%s8324_s11 + $0xdb0] sm:$0xff]   ;;  %v7805_v1 = vld [vmem:[%s8324_s11 + $0xd38] sm:$0xff]  }
 0x242   : > { %v6784_v8 = vpop.f32.mrb[23].mxu1  ;;  %7084 = vmatprep.subr.bf16.mxu1 %v7768_v57  ;;  %v7810_v6 = vld [vmem:[%s8324_s11 + $0xe00] sm:$0xff]  }
 0x243   : > { %v8848_v12 = vadd.f32 %v6782_v5, %v5035_v4  ;;  %7063 = vmatpush3.bf16.msra.mxu0 %v7769_v59  ;;  %v7806_v4 = vld [vmem:[%s8324_s11 + $0xdb8] sm:$0xff]   ;;  %v7809_v5 = vld [vmem:[%s8324_s11 + $0xec0] sm:$0xff]   ;;  %v7812_v8 = vld [vmem:[%s8324_s11 + $0xe48] sm:$0xff]  }
 0x244   : > { %7064 = vmatprep.subr.bf16.mxu0 %v7771_v62 }
 0x245   : > { %7085 = vmatpush3.bf16.msra.mxu1 %v7770_v7  ;;  %v1633_v7 = vcombine.high %v1617_v2, %v1617_v2 }
 0x246   : > { %7086 = vmatprep.subr.bf16.mxu1 %v7772_v9  ;;  %v7811_v9 = vld [vmem:[%s8324_s11 + $0xe80] sm:$0xff]  }
 0x247   : > { %7065 = vmatpush3.bf16.msra.mxu0 %v7773_v13  ;;  %v7815_v13 = vld [vmem:[%s8324_s11 + $0xe88] sm:$0xff]  }
 0x248   : > { %7094 = vmatprep.subr.bf16.mxu0 %v7775_v16  ;;  %v7820_v16 = vld [vmem:[%s8324_s11 + $0xe58] sm:$0xff]  }
 0x249   : > { %7087 = vmatpush3.bf16.msra.mxu1 %v7774_v18  ;;  %v7821_v18 = vld [vmem:[%s8324_s11 + $0xed8] sm:$0xff]  }
 0x24a   : > { %5593 = vmatmul.mubr.bf16.vlgmr.msra.gmra.mrb[48].mxu0 %v1610_v15  ;;  %7116 = vmatprep.subr.bf16.mxu1 %v7776_v20  ;;  %v7818_v15 = vld [vmem:[%s8324_s11 + $0xe10] sm:$0xff]   ;;  %v7824_v20 = vld [vmem:[%s8324_s11 + $0xe60] sm:$0xff]  }
 0x24b   : > { %7095 = vmatpush3.bf16.msra.mxu0 %v7777_v22  ;;  %5672 = vmatprep.mubr.bf16.mxu0 %v1631_v21  ;;  %v7823_v21 = vld [vmem:[%s8324_s11 + $0xe98] sm:$0xff]   ;;  %v7825_v22 = vld [vmem:[%s8324_s11 + $0xee0] sm:$0xff]  }
 0x24c   : > { %5633 = vmatmul.mubr.bf16.vlgmr.msra.gmra.mrb[48].mxu1 %v1632_v23  ;;  %7096 = vmatprep.subr.bf16.mxu0 %v7779_v24  ;;  %v7826_v23 = vld [vmem:[%s8324_s11 + $0xe20] sm:$0xff]   ;;  %v7828_v24 = vld [vmem:[%s8324_s11 + $0xe68] sm:$0xff]  }
 0x24d   : > { %7117 = vmatpush3.bf16.msra.mxu1 %v7778_v25  ;;  %5712 = vmatprep.mubr.bf16.mxu1 %v1635_v26  ;;  %v7827_v25 = vld [vmem:[%s8324_s11 + $0xea0] sm:$0xff]   ;;  %v7829_v26 = vld [vmem:[%s8324_s11 + $0xee8] sm:$0xff]  }
 0x24e   : > { %7118 = vmatprep.subr.bf16.mxu1 %v7780_v27  ;;  %v7830_v27 = vld [vmem:[%s8324_s11 + $0xe28] sm:$0xff]  }
 0x24f   : > { %7097 = vmatpush3.bf16.msra.mxu0 %v7781_v28  ;;  %v7832_v28 = vld [vmem:[%s8324_s11 + $0xe70] sm:$0xff]  }
 0x250   : > { %7098 = vmatprep.subr.bf16.mxu0 %v7783_v29 }
 0x251   : > { %7119 = vmatpush3.bf16.msra.mxu1 %v7782_v30  ;;  %v7831_v30 = vld [vmem:[%s8324_s11 + $0xea8] sm:$0xff]  }
 0x252   : > { %7120 = vmatprep.subr.bf16.mxu1 %v7784_v31 }
 0x253   : > { %7099 = vmatpush3.bf16.msra.mxu0 %v7785_v32  ;;  %v7833_v32 = vld [vmem:[%s8324_s11 + $0xef0] sm:$0xff]  }
 0x254   : > { %7100 = vmatprep.subr.bf16.mxu0 %v7787_v33 }
 0x255   : > { %7121 = vmatpush3.bf16.msra.mxu1 %v7786_v34 }
 0x256   : > { %7122 = vmatprep.subr.bf16.mxu1 %v7788_v35 }
 0x257   : > { %7101 = vmatpush3.bf16.msra.mxu0 %v7789_v36  ;;  %v7834_v36 = vld [vmem:[%s8324_s11 + $0xe30] sm:$0xff]  }
 0x258   : > { %7102 = vmatprep.subr.bf16.mxu0 %v7791_v37  ;;  %v7836_v37 = vld [vmem:[%s8324_s11 + $0xe78] sm:$0xff]  }
 0x259   : > { %7123 = vmatpush3.bf16.msra.mxu1 %v7790_v38 }
 0x25a   : > { %7124 = vmatprep.subr.bf16.mxu1 %v7792_v39 }
 0x25b   : > { %7103 = vmatpush3.bf16.msra.mxu0 %v7793_v40 }
 0x25c   : > { %7104 = vmatprep.subr.bf16.mxu0 %v7795_v41 }
 0x25d   : > { %7125 = vmatpush3.bf16.msra.mxu1 %v7794_v43  ;;  %v6802_v47 = vpop.f32.mrb[24].mxu0 }
 0x25e   : > { %v6803_v49 = vpop.f32.mrb[25].mxu0  ;;  %7126 = vmatprep.subr.bf16.mxu1 %v7796_v44  ;;  %v7835_v44 = vld [vmem:[%s8324_s11 + $0xeb0] sm:$0xff]  }
 0x25f   : > { %v6824_v51 = vpop.f32.mrb[24].mxu1  ;;  %v6804_v52 = vadd.f32 %v6803_v49, %v6802_v47  ;;  %v6805_v53 = vpop.f32.mrb[26].mxu0  ;;  %7105 = vmatpush3.bf16.msra.mxu0 %v7797_v45  ;;  %v6032_v45 = vld.sshfl [vmem:[%s8317_s13 + $0x38] sm:$0x33 pattern:$0x75316420] }
 0x260   : > { %v6825_v57 = vpop.f32.mrb[25].mxu1  ;;  %v6806_v58 = vpop.f32.mrb[27].mxu0  ;;  %7106 = vmatprep.subr.bf16.mxu0 %v7799_v46  ;;  %v7837_v47 = vld [vmem:[%s8324_s11 + $0xef8] sm:$0xff]  }
 0x261   : > { %v5115_v59 = vadd.f32 %v6804_v52, %v8848_v12  ;;  %v6826_v60 = vadd.f32 %v6825_v57, %v6824_v51  ;;  %v6827_v55 = vpop.f32.mrb[26].mxu1  ;;  %7127 = vmatpush3.bf16.msra.mxu1 %v7798_v48  ;;  %v7816_v12 = vld [vmem:[%s8324_s11 + $0xe50] sm:$0xff]   ;;  %v1643_v48 = vcombine.high %v6032_v45, %v6032_v45  ;;  %v1650_v52 = vrot.slane %v6032_v45, %v8375_v42  ;;  %v7839_v53 = vld [vmem:[%s8324_s11 + $0xeb8] sm:$0xff]  }
 0x262   : > { %v6828_v62 = vpop.f32.mrb[27].mxu1  ;;  %7128 = vmatprep.subr.bf16.mxu1 %v7800_v50  ;;  %v7838_v50 = vld [vmem:[%s8324_s11 + $0xe38] sm:$0xff]  }
 0x263   : > { %v8888_v0 = vadd.f32 %v6826_v60, %v5115_v59  ;;  %7107 = vmatpush3.bf16.msra.mxu0 %v7801_v54  ;;  %v1657_v51 = vrot.slane %v1643_v48, %v8375_v42 }
 0x264   : > { %7108 = vmatprep.subr.bf16.mxu0 %v7803_v56  ;;  %v1658_v56 = vcombine.high %v1650_v52, %v1650_v52 }
 0x265   : > { %7129 = vmatpush3.bf16.msra.mxu1 %v7802_v61  ;;  %v1659_v54 = vcombine.high %v1657_v51, %v1657_v51 }
 0x266   : > { %7130 = vmatprep.subr.bf16.mxu1 %v7804_v63 }
 0x267   : > { %7109 = vmatpush3.bf16.msra.mxu0 %v7805_v1 }
 0x268   : > { %7138 = vmatprep.subr.bf16.mxu0 %v7808_v3 }
 0x269   : > { %7131 = vmatpush3.bf16.msra.mxu1 %v7806_v4 }
 0x26a   : > { %5673 = vmatmul.mubr.bf16.vlgmr.msra.gmra.mrb[52].mxu0 %v1617_v2  ;;  %7160 = vmatprep.subr.bf16.mxu1 %v7809_v5 }
 0x26b   : > { %7139 = vmatpush3.bf16.msra.mxu0 %v7810_v6  ;;  %5752 = vmatprep.mubr.bf16.mxu0 %v1657_v51 }
 0x26c   : > { %5713 = vmatmul.mubr.bf16.vlgmr.msra.gmra.mrb[52].mxu1 %v1633_v7  ;;  %7140 = vmatprep.subr.bf16.mxu0 %v7812_v8 }
 0x26d   : > { %7161 = vmatpush3.bf16.msra.mxu1 %v7811_v9  ;;  %5792 = vmatprep.mubr.bf16.mxu1 %v1659_v54 }
 0x26e   : > { %7162 = vmatprep.subr.bf16.mxu1 %v7813_v10 }
 0x26f   : > { %7141 = vmatpush3.bf16.msra.mxu0 %v7814_v11 }
 0x270   : > { %7142 = vmatprep.subr.bf16.mxu0 %v7816_v12 }
 0x271   : > { %7163 = vmatpush3.bf16.msra.mxu1 %v7815_v13 }
 0x272   : > { %7164 = vmatprep.subr.bf16.mxu1 %v7817_v14 }
 0x273   : > { %7143 = vmatpush3.bf16.msra.mxu0 %v7818_v15 }
 0x274   : > { %7144 = vmatprep.subr.bf16.mxu0 %v7820_v16 }
 0x275   : > { %7165 = vmatpush3.bf16.msra.mxu1 %v7819_v17 }
 0x276   : > { %7166 = vmatprep.subr.bf16.mxu1 %v7821_v18 }
 0x277   : > { %7145 = vmatpush3.bf16.msra.mxu0 %v7822_v19 }
 0x278   : > { %7146 = vmatprep.subr.bf16.mxu0 %v7824_v20 }
 0x279   : > { %7167 = vmatpush3.bf16.msra.mxu1 %v7823_v21 }
 0x27a   : > { %7168 = vmatprep.subr.bf16.mxu1 %v7825_v22 }
 0x27b   : > { %7147 = vmatpush3.bf16.msra.mxu0 %v7826_v23 }
 0x27c   : > { %7148 = vmatprep.subr.bf16.mxu0 %v7828_v24 }
 0x27d   : > { %7169 = vmatpush3.bf16.msra.mxu1 %v7827_v25  ;;  %v6846_v29 = vpop.f32.mrb[28].mxu0 }
 0x27e   : > { %v6847_v31 = vpop.f32.mrb[29].mxu0  ;;  %7170 = vmatprep.subr.bf16.mxu1 %v7829_v26 }
 0x27f   : > { %v6868_v33 = vpop.f32.mrb[28].mxu1  ;;  %v6848_v34 = vadd.f32 %v6847_v31, %v6846_v29  ;;  %v6849_v35 = vpop.f32.mrb[30].mxu0  ;;  %7149 = vmatpush3.bf16.msra.mxu0 %v7830_v27 }
 0x280   : > { %v6869_v38 = vpop.f32.mrb[29].mxu1  ;;  %v6850_v39 = vpop.f32.mrb[31].mxu0  ;;  %7150 = vmatprep.subr.bf16.mxu0 %v7832_v28 }
 0x281   : > { %v5195_v40 = vadd.f32 %v6848_v34, %v8888_v0  ;;  %v6870_v41 = vadd.f32 %v6869_v38, %v6868_v33  ;;  %v6871_v43 = vpop.f32.mrb[30].mxu1  ;;  %7171 = vmatpush3.bf16.msra.mxu1 %v7831_v30 }
 0x282   : > { %v6872_v46 = vpop.f32.mrb[31].mxu1  ;;  %7172 = vmatprep.subr.bf16.mxu1 %v7833_v32 }
 0x283   : > { %v5235_v49 = vadd.f32 %v6870_v41, %v5195_v40  ;;  %7151 = vmatpush3.bf16.msra.mxu0 %v7834_v36 }
 0x284   : > { %7152 = vmatprep.subr.bf16.mxu0 %v7836_v37 }
 0x285   : > { %7173 = vmatpush3.bf16.msra.mxu1 %v7835_v44 }
 0x286   : > { %7174 = vmatprep.subr.bf16.mxu1 %v7837_v47 }
 0x287   : > { %7153 = vmatpush3.bf16.msra.mxu0 %v7838_v50 }
 0x289   : > { %7175 = vmatpush3.bf16.msra.mxu1 %v7839_v53 }
 0x28a   : > { %5753 = vmatmul.mubr.bf16.vlgmr.msra.gmra.mrb[56].mxu0 %v1650_v52 }
 0x28c   : > { %5793 = vmatmul.mubr.bf16.vlgmr.msra.gmra.mrb[56].mxu1 %v1658_v56 }
 0x29d   : > { %v6890_v57 = vpop.f32.mrb[32].mxu0 }
 0x29e   : > { %v6891_v58 = vpop.f32.mrb[33].mxu0 }
 0x29f   : > { %v6912_v59 = vpop.f32.mrb[32].mxu1  ;;  %v6892_v60 = vadd.f32 %v6891_v58, %v6890_v57  ;;  %v6893_v55 = vpop.f32.mrb[34].mxu0 }
 0x2a0   : > { %v6913_v61 = vpop.f32.mrb[33].mxu1  ;;  %v6894_v62 = vpop.f32.mrb[35].mxu0 }
 0x2a1   : > { %v5275_v63 = vadd.f32 %v6892_v60, %v5235_v49  ;;  %v6914_v42 = vadd.f32 %v6913_v61, %v6912_v59  ;;  %v6915_v0 = vpop.f32.mrb[34].mxu1 }
 0x2a2   : > { %v6916_v1 = vpop.f32.mrb[35].mxu1 }
 0x2a3   : > { %v5315_v2 = vadd.f32 %v6914_v42, %v5275_v63 }
 0x2bd   : > { %v6934_v3 = vpop.f32.mrb[36].mxu0 }
 0x2be   : > { %v6935_v4 = vpop.f32.mrb[37].mxu0 }
 0x2bf   : > { %v6956_v5 = vpop.f32.mrb[36].mxu1  ;;  %v6936_v6 = vadd.f32 %v6935_v4, %v6934_v3  ;;  %v6937_v7 = vpop.f32.mrb[38].mxu0 }
 0x2c0   : > { %v6957_v8 = vpop.f32.mrb[37].mxu1  ;;  %v6938_v9 = vpop.f32.mrb[39].mxu0 }
 0x2c1   : > { %v5355_v10 = vadd.f32 %v6936_v6, %v5315_v2  ;;  %v6958_v11 = vadd.f32 %v6957_v8, %v6956_v5  ;;  %v6959_v12 = vpop.f32.mrb[38].mxu1  ;;  %v316_v9 = vld [vmem:[#allocation2] sm:$0x3] }
 0x2c2   : > { %v6960_v13 = vpop.f32.mrb[39].mxu1 }
 0x2c3   : > { %v5395_v14 = vadd.f32 %v6958_v11, %v5355_v10  ;;  %v5816_v13 = vld [vmem:[#allocation9] sm:$0xff] (!%p6513_p12) }
 0x2dd   : > { %v6978_v15 = vpop.f32.mrb[40].mxu0 }
 0x2de   : > { %v6979_v16 = vpop.f32.mrb[41].mxu0 }
 0x2df   : > { %v7000_v17 = vpop.f32.mrb[40].mxu1  ;;  %v6980_v18 = vadd.f32 %v6979_v16, %v6978_v15  ;;  %v6981_v19 = vpop.f32.mrb[42].mxu0  ;;  %v5818_v15 = vld [vmem:[#allocation9 + $0x10] sm:$0xff] (!%p6513_p12)  ;;  %v8073_v16 = vmov (!%p6513_p12), 0.0|0.0  }
 0x2e0   : > { %v7001_v20 = vpop.f32.mrb[41].mxu1  ;;  %v6982_v21 = vpop.f32.mrb[43].mxu0  ;;  %7234 = vmatprep.subr.bf16.mxu0 (!%p6513_p12), %v8073_v16  ;;  %v8075_v19 = vmov (!%p6513_p12), 0.0  }
 0x2e1   : > { %v5435_v22 = vadd.f32 %v6980_v18, %v5395_v14  ;;  %v7002_v23 = vadd.f32 %v7001_v20, %v7000_v17  ;;  %v7003_v24 = vpop.f32.mrb[42].mxu1  ;;  %v5817_v14 = vld [vmem:[#allocation9 + $0x8] sm:$0xff] (!%p6513_p12)  ;;  %v5819_v18 = vld [vmem:[#allocation9 + $0x18] sm:$0xff] (!%p6513_p12)  ;;  %7231 = vmatprep.mubr.msk.f32.mxu0 (!%p6513_p12), %vm8074_vm0, %v8075_v19  ;;  %v5820_v21 = vld [vmem:[#allocation9 + $0x20] sm:$0xff] (!%p6513_p12) }
 0x2e2   : > { %v7004_v25 = vpop.f32.mrb[43].mxu1  ;;  %v7235_v17 = vpack.c.bf16 (!%p6513_p12), %v5817_v14, %v5816_v13  ;;  %v7238_v20 = vpack.c.bf16 (!%p6513_p12), %v5819_v18, %v5818_v15  ;;  %v5822_v24 = vld [vmem:[#allocation9 + $0x30] sm:$0xff] (!%p6513_p12) }
 0x2e3   : > { %v5475_v26 = vadd.f32 %v7002_v23, %v5435_v22  ;;  %v5821_v22 = vld [vmem:[#allocation9 + $0x28] sm:$0xff] (!%p6513_p12)  ;;  %v5823_v25 = vld [vmem:[#allocation9 + $0x38] sm:$0xff] (!%p6513_p12) }
 0x2e4   : > { %7236 = vmatpush3.bf16.msra.mxu0 (!%p6513_p12), %v7235_v17  ;;  %v7241_v23 = vpack.c.bf16 (!%p6513_p12), %v5821_v22, %v5820_v21 }
 0x2e5   : > { %7237 = vmatprep.subr.bf16.mxu0 (!%p6513_p12), %v8073_v16 }
 0x2e8   : > { %7239 = vmatpush3.bf16.msra.mxu0 (!%p6513_p12), %v7238_v20 }
 0x2e9   : > { %7240 = vmatprep.subr.bf16.mxu0 (!%p6513_p12), %v8073_v16 }
 0x2ec   : > { %7242 = vmatpush3.bf16.msra.mxu0 (!%p6513_p12), %v7241_v23 }
 0x2ed   : > { %7243 = vmatprep.subr.bf16.mxu0 (!%p6513_p12), %v8073_v16 }
 0x2fd   : > { %v7022_v27 = vpop.f32.mrb[44].mxu0 }
 0x2fe   : > { %v7023_v28 = vpop.f32.mrb[45].mxu0 }
 0x2ff   : > { %v7044_v29 = vpop.f32.mrb[44].mxu1  ;;  %v7024_v30 = vadd.f32 %v7023_v28, %v7022_v27  ;;  %v7025_v31 = vpop.f32.mrb[46].mxu0  ;;  %v5824_v27 = vld [vmem:[#allocation9 + $0x40] sm:$0xff] (!%p6513_p12)  ;;  %v5825_v28 = vld [vmem:[#allocation9 + $0x48] sm:$0xff] (!%p6513_p12) }
 0x300   : > { %v7045_v32 = vpop.f32.mrb[45].mxu1  ;;  %v7026_v33 = vpop.f32.mrb[47].mxu0  ;;  %v5827_v31 = vld [vmem:[#allocation9 + $0x58] sm:$0xff] (!%p6513_p12) }
 0x301   : > { %v5515_v34 = vadd.f32 %v7024_v30, %v5475_v26  ;;  %v7046_v35 = vadd.f32 %v7045_v32, %v7044_v29  ;;  %v7047_v36 = vpop.f32.mrb[46].mxu1  ;;  %v7244_v26 = vpack.c.bf16 (!%p6513_p12), %v5823_v25, %v5822_v24  ;;  %v7247_v29 = vpack.c.bf16 (!%p6513_p12), %v5825_v28, %v5824_v27  ;;  %v5826_v30 = vld [vmem:[#allocation9 + $0x50] sm:$0xff] (!%p6513_p12)  ;;  %v5828_v33 = vld [vmem:[#allocation9 + $0x60] sm:$0xff] (!%p6513_p12) }
 0x302   : > { %v7048_v37 = vpop.f32.mrb[47].mxu1  ;;  %v7250_v32 = vpack.c.bf16 (!%p6513_p12), %v5827_v31, %v5826_v30 }
 0x303   : > { %v5555_v38 = vadd.f32 %v7046_v35, %v5515_v34  ;;  %7245 = vmatpush3.bf16.msra.mxu0 (!%p6513_p12), %v7244_v26  ;;  %v5829_v34 = vld [vmem:[#allocation9 + $0x68] sm:$0xff] (!%p6513_p12)  ;;  %v6514_v37 = vld [vmem:[#allocation8] ss:$0 sm:$0xff] (!%p6513_p12) }
 0x304   : > { %7246 = vmatprep.subr.bf16.mxu0 (!%p6513_p12), %v8073_v16  ;;  %v7253_v35 = vpack.c.bf16 (!%p6513_p12), %v5829_v34, %v5828_v33 }
 0x307   : > { %7248 = vmatpush3.bf16.msra.mxu0 (!%p6513_p12), %v7247_v29 }
 0x308   : > { %7249 = vmatprep.subr.bf16.mxu0 (!%p6513_p12), %v8073_v16 }
 0x30b   : > { %7251 = vmatpush3.bf16.msra.mxu0 (!%p6513_p12), %v7250_v32 }
 0x30c   : > { %7252 = vmatprep.subr.bf16.mxu0 (!%p6513_p12), %v8073_v16 }
 0x30f   : > { %7254 = vmatpush3.bf16.msra.mxu0 (!%p6513_p12), %v7253_v35 }
 0x310   : > { %7255 = vmatprep.subr.bf16.mxu0 (!%p6513_p12), %v8073_v16 }
 0x31d   : > { %v7066_v39 = vpop.f32.mrb[48].mxu0 }
 0x31e   : > { %v7067_v40 = vpop.f32.mrb[49].mxu0 }
 0x31f   : > { %v7088_v41 = vpop.f32.mrb[48].mxu1  ;;  %v7068_v43 = vadd.f32 %v7067_v40, %v7066_v39  ;;  %v7069_v44 = vpop.f32.mrb[50].mxu0  ;;  %v5831_v39 = vld [vmem:[#allocation9 + $0x78] sm:$0xff] (!%p6513_p12) }
 0x320   : > { %v7089_v45 = vpop.f32.mrb[49].mxu1  ;;  %v7070_v46 = vpop.f32.mrb[51].mxu0  ;;  %v6515_v44 = vld [vmem:[#allocation11] ss:$0 sm:$0xff] (!%p6513_p12) }
 0x321   : > { %v5595_v47 = vadd.f32 %v7068_v43, %v5555_v38  ;;  %v7090_v48 = vadd.f32 %v7089_v45, %v7088_v41  ;;  %v7091_v49 = vpop.f32.mrb[50].mxu1  ;;  %v5830_v38 = vld [vmem:[#allocation9 + $0x70] sm:$0xff] (!%p6513_p12) }
 0x322   : > { %v7092_v50 = vpop.f32.mrb[51].mxu1  ;;  %v7256_v41 = vpack.c.bf16 (!%p6513_p12), %v5831_v39, %v5830_v38 }
 0x323   : > { %v5635_v51 = vadd.f32 %v7090_v48, %v5595_v47 }
 0x324   : > { %7257 = vmatpush3.bf16.msra.mxu0 (!%p6513_p12), %v7256_v41 }
 0x33d   : > { %v7110_v52 = vpop.f32.mrb[52].mxu0 }
 0x33e   : > { %v7111_v53 = vpop.f32.mrb[53].mxu0 }
 0x33f   : > { %v7132_v54 = vpop.f32.mrb[52].mxu1  ;;  %v7112_v56 = vadd.f32 %v7111_v53, %v7110_v52  ;;  %v7113_v57 = vpop.f32.mrb[54].mxu0 }
 0x340   : > { %v7133_v58 = vpop.f32.mrb[53].mxu1  ;;  %v7114_v59 = vpop.f32.mrb[55].mxu0 }
 0x341   : > { %v5675_v60 = vadd.f32 %v7112_v56, %v5635_v51  ;;  %v7134_v55 = vadd.f32 %v7133_v58, %v7132_v54  ;;  %v7135_v61 = vpop.f32.mrb[54].mxu1 }
 0x342   : > { %v7136_v62 = vpop.f32.mrb[55].mxu1 }
 0x343   : > { %v5715_v63 = vadd.f32 %v7134_v55, %v5675_v60 }
 0x35d   : > { %v7154_v42 = vpop.f32.mrb[56].mxu0 }
 0x35e   : > { %v7155_v0 = vpop.f32.mrb[57].mxu0 }
 0x35f   : > { %v7176_v1 = vpop.f32.mrb[56].mxu1  ;;  %v7156_v2 = vadd.f32 %v7155_v0, %v7154_v42  ;;  %v7157_v3 = vpop.f32.mrb[58].mxu0 }
 0x360   : > { %v7177_v4 = vpop.f32.mrb[57].mxu1  ;;  %v7158_v5 = vpop.f32.mrb[59].mxu0 }
 0x361   : > { %v5755_v6 = vadd.f32 %v7156_v2, %v5715_v63  ;;  %v7178_v7 = vadd.f32 %v7177_v4, %v7176_v1  ;;  %v7179_v8 = vpop.f32.mrb[58].mxu1  ;;  %5805 = sbr.rel (%p6513_p12) target bundleno = 1098 (0x44a), region = 68 }
 0x362   : > { %v7180_v10 = vpop.f32.mrb[59].mxu1 }
 0x363   : > { %v5795_v11 = vadd.f32 %v7178_v7, %v5755_v6 }
 0x365   : > { %v5800_v12 = vadd.f32 %v5795_v11, %v316_v9 }
 0x367   : > { %5801 = vst [vmem:[#allocation2] sm:$0x3] %v5800_v12 }
 0x36e   : > { %v5806_v36 = vld [vmem:[#allocation2] sm:$0x3] }
 0x36f   : > { %v5814_v40 = vadd.f32 %v6514_v37, %v5806_v36 }
 0x371   : > { %v5815_v43 = vmax.f32 %v5814_v40, 0.0 }
 0x373   : > { %7232 = vmatmul.mubr.f32.vlgmr.msra.gmra.mrb[0].mxu0 %v5815_v43 }
 0x446   : > { %v5905_v45 = vpop.f32.mrb[0].mxu0 }
 0x447   : > { %v5906_v46 = vadd.f32 %v6515_v44, %v5905_v45  ;;  %v7233_v47 = vpop.f32.mrb[1].mxu0 }
 0x449   : > { %5910 = vst.msk [vmem:[#allocation12] sm:$0x3] %vm5909_vm1, %v5906_v46 }
 0x44a PF: > { %p7306_p0 = scmp.eq.s32.totalorder %s8126_s22, 3  ;;  %s8076_s23 = smov [#allocation12]  }
 0x44b   : > { %s5918_s24 = sshll.u32 %s8076_s23, 4  ;;  %s5919_s24 = int_to_ptr.vmem [resolvable:$true] %s5918_s24 }
 0x44c   : > { %s7984_s14 = scalar_lea.vmem %s5919_s24, 32  ;;  %p7991_p10 = scmp.lt.s32.totalorder %s5919_s24, %s5919_s24 }
 0x44d   : > { %p7985_p2 = scmp.ne.s32.totalorder %s5919_s24, %s7984_s14  ;;  %p7992_p9 = scmp.lt.s32.totalorder %s7984_s14, %s7984_s14 }
 0x44f   : > { %p7986_p13 = pnand %p7985_p2, %p7306_p0  ;;  %p7993_p6 = por %p7992_p9, %p7991_p10 }
 0x451   : > { %p7987_p3 = pneg %p7986_p13 }
 0x453   : > { %p7994_p7 = pnand %p7993_p6, %p7987_p3 }
 0x455   : > { %7997 = shalt.err (!%p7994_p7)
}
 0x456   : > { %s7998_s30 = scalar_lea.hbm %s8972_s5, 32 }
 0x457   : > { %p7999_p8 = scmp.ne.s32.totalorder %s8972_s5, %s7998_s30  ;;  %p8004_p4 = scmp.lt.u32.totalorder %s7998_s30, %s8972_s5 }
 0x459   : > { %p8000_p11 = pnand %p7999_p8, %p7306_p0 }
 0x45b   : > { %p8001_p1 = pneg %p8000_p11 }
 0x45d   : > { %p8006_p5 = pnand %p8004_p4, %p8001_p1 }
 0x45f   : > { %8009 = shalt.err (!%p8006_p5)
}
 0x460   : > { %7279 = dma.vmem_to_hbm [thread:$0]  (%p7306_p0), %s5919_s24, 32, %s8972_s5, [#allocation5]  }
 0x461   : > { %8043 = dma.done.wait (%p7306_p0), [#allocation5], 32  }
 0x462   : > { %8045 = vsyncadd (%p7306_p0), [#allocation5], 4294967264 }
 0x463 PF: > { %p20_p12 = scmp.ge.s32.totalorder %s8222_s12, 6   ;;  %s8988_s18 = smov %s8052_s19 }
 0x464   : > { %s8989_s19 = smov %s8056_s20  ;;  %s8990_s20 = smov %s8232_s29 }
 0x465   : > { %s8991_s21 = smov %s8222_s12  ;;  %22 = sbr.rel (!%p20_p12) target bundleno = 7 (0x7), region = 110 }
 0x46c   :  { %5931 = vsyncpa [#allocation4], 1 }
 0x46d   :  { %5933 = vsyncpa [#allocation4 + $0x1], 1 }
 0x46e   :  { %5934 = vsyncpa [#allocation7], 1 }
 0x46f   :  { %5936 = vsyncpa [#allocation7 + $0x1], 1 }
 0x470   :  { %5937 = vsyncpa [#allocation10], 1 }
 0x471   :  { %5938 = vsyncpa [#allocation5], 1 }
 0x472   :  { %5940 = vsyncpa [#allocation5 + $0x1], 1 }

</bundles_post_ra>
